<compile_context>
chip_gen: v7x
topology: tpu7x:2x2x1
jax: 0.10.0
libtpu: 0.0.40
codegen_flags: <defaults>
</compile_context>

<pallas_src>
import functools
import math

import jax
import jax.numpy as jnp
from jax import lax
from jax.experimental import pallas as pl
from jax.experimental.pallas import tpu as pltpu


def _wrap_i32(v: int) -> int:
    """Wrap an arbitrary Python int into signed int32 range (two's complement)."""
    v &= 0xFFFFFFFF
    return v - (1 << 32) if v >= (1 << 31) else v


# lowbias32 hash constants (int32 arithmetic wraps like uint32).
_H1 = _wrap_i32(0x7FEB352D)
_H2 = _wrap_i32(0x846CA68B)
_EXP_ONE = _wrap_i32(0x3F800000)   # bit pattern of 1.0f


def _srl(x, n):
    """Logical right shift on int32."""
    return lax.shift_right_logical(x, jnp.int32(n))


def _fmix32(x):
    """lowbias32 finalizer: good-avalanche 32-bit mixing (int32, wrapping)."""
    x = x ^ _srl(x, 16)
    x = x * jnp.int32(_H1)
    x = x ^ _srl(x, 15)
    x = x * jnp.int32(_H2)
    x = x ^ _srl(x, 16)
    return x


def gaussian_noise_kernel(x_ref, o_ref, *, scale, key, chunk_rows, n_chunks,
                          two_sided):
    tr, cc = x_ref.shape
    block_elems = tr * cc

    # Scalar base per block: key folded into the base (no per-element xor).
    base0 = pl.program_id(0) * jnp.int32(block_elems) + jnp.int32(key)

    h = chunk_rows // 2 if two_sided else chunk_rows

    # Hoisted per-chunk element offsets (identical every chunk; JAX does not CSE
    # broadcast/iota inside loops, so build it once).
    idx = (lax.broadcasted_iota(jnp.int32, (h, cc), 0) * jnp.int32(cc)
           + lax.broadcasted_iota(jnp.int32, (h, cc), 1))

    two_pi = jnp.float32(2.0 * math.pi)
    sc = jnp.float32(scale)
    chunk_stride = jnp.int32(chunk_rows * cc)

    def chunk_body(j, carry):
        r0 = pl.multiple_of(j * chunk_rows, chunk_rows)

        # One counter per Box-Muller pair (top-half row of this chunk).
        cnt = idx + (base0 + j * chunk_stride)
        h0 = _fmix32(cnt)
        # Cheap second stream: one extra xor-shift + multiply round.
        h1 = (h0 ^ _srl(h0, 16)) * jnp.int32(_H2)

        # Top 23 bits -> mantissa of a float in [1, 2).
        u1 = 2.0 - lax.bitcast_convert_type(
            _srl(h0, 9) | jnp.int32(_EXP_ONE), jnp.float32)          # (0, 1]  log-safe
        u2 = lax.bitcast_convert_type(
            _srl(h1, 9) | jnp.int32(_EXP_ONE), jnp.float32) - 1.0     # [0, 1)

        r = sc * jnp.sqrt(-2.0 * jnp.log(u1))   # scale folded in once per pair
        c = jnp.cos(two_pi * u2)

        x_top = x_ref[pl.ds(r0, h), :].astype(jnp.float32)
        o_ref[pl.ds(r0, h), :] = (x_top + r * c).astype(o_ref.dtype)

        if two_sided:
            # sin(theta) -> sign * sqrt(1 - cos^2): EUP sqrt + mul + select
            # instead of a second trig expansion.  Sign bit comes from an unused
            # low bit of h0 (mantissa uses bits 9..31), keeping (c, s) uniform on
            # the unit circle.
            sign = jnp.where((h0 & jnp.int32(1)) == 0,
                             jnp.float32(1.0), jnp.float32(-1.0))
            s = sign * jnp.sqrt(jnp.maximum(1.0 - c * c, 0.0))
            x_bot = x_ref[pl.ds(r0 + h, h), :].astype(jnp.float32)
            o_ref[pl.ds(r0 + h, h), :] = (x_bot + r * s).astype(o_ref.dtype)
        return carry

    lax.fori_loop(0, n_chunks, chunk_body, 0)


_CAP_COLS = 1024


def _choose_cols(n):
    """Largest multiple of 128 (<= 1024) that divides n exactly, else None."""
    c = _CAP_COLS
    while c >= 128:
        if n % c == 0:
            return c
        c -= 128
    return None


def _round_up(v, m):
    return ((v + m - 1) // m) * m


def gaussian_noise(x, *, scale=0.1, seed=1, donate=False):
    """y = x + N(0, scale), elementwise, via a Pallas TPU kernel."""
    orig_shape = x.shape
    dtype = x.dtype
    if not jnp.issubdtype(dtype, jnp.floating):
        # The PyTorch module is float-only (it adds a float32 numpy array).
        raise TypeError("GaussianNoise expects a floating-point input.")
    n = x.size
    if n == 0:
        return x

    itemsize = jnp.dtype(dtype).itemsize

    cols = _choose_cols(n)
    padded = cols is None
    if padded:
        # No lane-dense factorization of n: pad the flattened array to a
        # 128-wide slab (unmasked full-width stores) and slice afterwards.
        cols = 128
        rows = -(-n // cols)
        x2 = jnp.pad(x.reshape(-1), (0, rows * cols - n)).reshape(rows, cols)
    else:
        rows = n // cols
        x2 = x.reshape(rows, cols)   # contiguous reshape: no pad, no astype

    # Sublane granularity: 8 rows for 4-byte dtypes, 16 for bf16/f16, so each
    # half of a chunk stays on an (8,128)/(16,128) tile boundary.
    sub = max(8, 32 // itemsize)
    chunk_rows = 2 * sub
    while chunk_rows * cols < 4096:        # ~4 f32 vregs per half-chunk intermediate
        chunk_rows *= 2

    if rows < chunk_rows:
        # Tiny input: single block, one Box-Muller draw (cos branch) per element.
        two_sided = False
        chunk_rows = rows
        row_tile = rows
        n_chunks = 1
    else:
        two_sided = True
        # ~2 MiB (f32) DMA blocks hide per-step overhead; the in-kernel chunk
        # loop keeps live intermediates at vreg scale, so VMEM ~ 4x block bytes.
        target_rows = max(chunk_rows,
                          (512 * 1024 // cols) // chunk_rows * chunk_rows)
        row_tile = min((rows // chunk_rows) * chunk_rows, target_rows)
        if n * itemsize > (1 << 20):
            # Keep >= ~4 grid steps so both v7x TensorCores get work and
            # DMA/compute overlap exists for mid-sized arrays.
            quarter = max(chunk_rows, _round_up(-(-rows // 4), chunk_rows))
            row_tile = min(row_tile, quarter)
        n_chunks = row_tile // chunk_rows

    grid = (pl.cdiv(rows, row_tile),)

    key = _wrap_i32(seed * 0x9E3779B1 + 0x7F4A7C15)

    cost = pl.CostEstimate(
        flops=30 * n,
        transcendentals=2 * n,
        bytes_accessed=2 * n * itemsize,
    )

    kernel = functools.partial(
        gaussian_noise_kernel,
        scale=float(scale), key=key, chunk_rows=chunk_rows,
        n_chunks=n_chunks, two_sided=two_sided,
    )

    call = pl.pallas_call(
        kernel,
        out_shape=jax.ShapeDtypeStruct((rows, cols), dtype),
        grid=grid,
        in_specs=[pl.BlockSpec((row_tile, cols), lambda i: (i, 0))],
        out_specs=pl.BlockSpec((row_tile, cols), lambda i: (i, 0)),
        compiler_params=pltpu.CompilerParams(
            dimension_semantics=("parallel",),     # counter-based noise: order-free
            vmem_limit_bytes=32 * 1024 * 1024,
        ),
        cost_estimate=cost,
        input_output_aliases=({0: 0} if (donate and not padded) else {}),
    )
    out = call(x2)
    if padded:
        out = out.reshape(-1)[:n]
    return out.reshape(orig_shape)


if __name__ == "__main__":
    # TODO(synk): the exact numpy.default_rng(seed) stream cannot be reproduced in
    # a TPU kernel; the noise distribution (N(0, scale), seeded, deterministic)
    # matches, the bit-exact stream does not.
    root = jax.random.PRNGKey(0)
    k_small, k_big = jax.random.split(root)
    scale = 0.1

    # "Vector dataset" case matching the module's intended use: batch=8, feat=256.
    x_small = jax.random.normal(k_small, (8, 256), dtype=jnp.float32)
    y_small = jax.block_until_ready(gaussian_noise(x_small, scale=scale, seed=1))
    assert y_small.shape == x_small.shape and y_small.dtype == x_small.dtype
    ns = y_small - x_small
    assert abs(float(jnp.mean(ns))) < 0.02
    assert abs(float(jnp.std(ns)) - scale) < 0.02

    # Larger batch to exercise the paired (cos/sin) chunked path + noise stats.
    x_big = jax.random.normal(k_big, (512, 384), dtype=jnp.float32)
    y_big = jax.block_until_ready(gaussian_noise(x_big, scale=scale, seed=1))
    assert y_big.shape == x_big.shape and y_big.dtype == x_big.dtype
    nb = y_big - x_big
    assert abs(float(jnp.mean(nb))) < 0.02
    assert abs(float(jnp.std(nb)) - scale) < 0.02

    # Determinism: same seed -> identical noise.
    y_big2 = jax.block_until_ready(gaussian_noise(x_big, scale=scale, seed=1))
    assert bool(jnp.all(y_big2 == y_big))

    print("KERNEL_OK")
</pallas_src>

<mosaic_0001>
module attributes {stable_mosaic.version = 11 : i64} {
  func.func @gaussian_noise_kernel(%arg0: i32, %arg1: memref<2x1024xf32, #tpu.memory_space<vmem>>, %arg2: memref<2x1024xf32, #tpu.memory_space<vmem>>) attributes {dimension_semantics = [#tpu.dimension_semantics<parallel>], iteration_bounds = array<i64: 1>, scalar_prefetch = 0 : i64, scratch_operands = 0 : i64, tpu.core_type = #tpu.core_type<tc>, window_params = [{transform_indices = @transform_0, window_bounds = array<i64: 2, 1024>}, {transform_indices = @transform_1, window_bounds = array<i64: 2, 1024>}]} {
    %c2048_i32 = arith.constant 2048 : i32
    %0 = arith.muli %arg0, %c2048_i32 : i32
    %c495056326_i32 = arith.constant 495056326 : i32
    %1 = arith.addi %0, %c495056326_i32 : i32
    %2 = tpu.iota {dimensions = array<i32: 0>} : vector<2x1024xi32>
    %c1024_i32 = arith.constant 1024 : i32
    %3 = vector.broadcast %c1024_i32 : i32 to vector<2x1024xi32>
    %4 = arith.muli %2, %3 : vector<2x1024xi32>
    %5 = tpu.iota {dimensions = array<i32: 1>} : vector<2x1024xi32>
    %6 = arith.addi %4, %5 : vector<2x1024xi32>
    %c2048_i32_0 = arith.constant 2048 : i32
    %cst = arith.constant 1.000000e-01 : f32
    %cst_1 = arith.constant 6.28318548 : f32
    %c0_i32 = arith.constant 0 : i32
    %c2_i32 = arith.constant 2 : i32
    %7 = arith.muli %c0_i32, %c2_i32 : i32
    %8 = tpu.assume_multiple %7, 2 : i32
    %9 = arith.muli %c0_i32, %c2048_i32_0 : i32
    %10 = arith.addi %1, %9 : i32
    %11 = vector.broadcast %10 : i32 to vector<2x1024xi32>
    %12 = arith.addi %6, %11 : vector<2x1024xi32>
    %c16_i32 = arith.constant 16 : i32
    %13 = vector.broadcast %c16_i32 : i32 to vector<2x1024xi32>
    %14 = arith.shrui %12, %13 : vector<2x1024xi32>
    %15 = arith.xori %12, %14 : vector<2x1024xi32>
    %c2146121005_i32 = arith.constant 2146121005 : i32
    %16 = vector.broadcast %c2146121005_i32 : i32 to vector<2x1024xi32>
    %17 = arith.muli %15, %16 : vector<2x1024xi32>
    %c15_i32 = arith.constant 15 : i32
    %18 = vector.broadcast %c15_i32 : i32 to vector<2x1024xi32>
    %19 = arith.shrui %17, %18 : vector<2x1024xi32>
    %20 = arith.xori %17, %19 : vector<2x1024xi32>
    %c-2073254261_i32 = arith.constant -2073254261 : i32
    %21 = vector.broadcast %c-2073254261_i32 : i32 to vector<2x1024xi32>
    %22 = arith.muli %20, %21 : vector<2x1024xi32>
    %c16_i32_2 = arith.constant 16 : i32
    %23 = vector.broadcast %c16_i32_2 : i32 to vector<2x1024xi32>
    %24 = arith.shrui %22, %23 : vector<2x1024xi32>
    %25 = arith.xori %22, %24 : vector<2x1024xi32>
    %c16_i32_3 = arith.constant 16 : i32
    %26 = vector.broadcast %c16_i32_3 : i32 to vector<2x1024xi32>
    %27 = arith.shrui %25, %26 : vector<2x1024xi32>
    %28 = arith.xori %25, %27 : vector<2x1024xi32>
    %c-2073254261_i32_4 = arith.constant -2073254261 : i32
    %29 = vector.broadcast %c-2073254261_i32_4 : i32 to vector<2x1024xi32>
    %30 = arith.muli %28, %29 : vector<2x1024xi32>
    %c9_i32 = arith.constant 9 : i32
    %31 = vector.broadcast %c9_i32 : i32 to vector<2x1024xi32>
    %32 = arith.shrui %25, %31 : vector<2x1024xi32>
    %c1065353216_i32 = arith.constant 1065353216 : i32
    %33 = vector.broadcast %c1065353216_i32 : i32 to vector<2x1024xi32>
    %34 = arith.ori %32, %33 : vector<2x1024xi32>
    %35 = tpu.bitcast %34 : vector<2x1024xi32> -> vector<2x1024xf32>
    %cst_5 = arith.constant 2.000000e+00 : f32
    %36 = vector.broadcast %cst_5 : f32 to vector<2x1024xf32>
    %37 = arith.subf %36, %35 : vector<2x1024xf32>
    %c9_i32_6 = arith.constant 9 : i32
    %38 = vector.broadcast %c9_i32_6 : i32 to vector<2x1024xi32>
    %39 = arith.shrui %30, %38 : vector<2x1024xi32>
    %c1065353216_i32_7 = arith.constant 1065353216 : i32
    %40 = vector.broadcast %c1065353216_i32_7 : i32 to vector<2x1024xi32>
    %41 = arith.ori %39, %40 : vector<2x1024xi32>
    %42 = tpu.bitcast %41 : vector<2x1024xi32> -> vector<2x1024xf32>
    %cst_8 = arith.constant 1.000000e+00 : f32
    %43 = vector.broadcast %cst_8 : f32 to vector<2x1024xf32>
    %44 = arith.subf %42, %43 : vector<2x1024xf32>
    %45 = math.log %37 : vector<2x1024xf32>
    %cst_9 = arith.constant -2.000000e+00 : f32
    %46 = vector.broadcast %cst_9 : f32 to vector<2x1024xf32>
    %47 = arith.mulf %46, %45 : vector<2x1024xf32>
    %48 = math.sqrt %47 : vector<2x1024xf32>
    %49 = vector.broadcast %cst : f32 to vector<2x1024xf32>
    %50 = arith.mulf %49, %48 : vector<2x1024xf32>
    %51 = vector.broadcast %cst_1 : f32 to vector<2x1024xf32>
    %52 = arith.mulf %51, %44 : vector<2x1024xf32>
    %53 = math.cos %52 : vector<2x1024xf32>
    %54 = arith.index_cast %8 : i32 to index
    %c0 = arith.constant 0 : index
    %55 = vector.load %arg1[%54, %c0] : memref<2x1024xf32, #tpu.memory_space<vmem>>, vector<2x1024xf32>
    %56 = arith.mulf %50, %53 : vector<2x1024xf32>
    %57 = arith.addf %55, %56 : vector<2x1024xf32>
    %58 = arith.index_cast %8 : i32 to index
    %c0_10 = arith.constant 0 : index
    %59 = vector.load %arg2[%58, %c0_10] : memref<2x1024xf32, #tpu.memory_space<vmem>>, vector<2x1024xf32>
    tpu.vector_store %arg2[%58, %c0_10], %57 {strides = array<i32>} : memref<2x1024xf32, #tpu.memory_space<vmem>>, vector<2x1024xf32>,
    %c1_i32 = arith.constant 1 : i32
    return
  }
  func.func @transform_0(%arg0: i32) -> (i32, i32) {
    %c0_i32 = arith.constant 0 : i32
    %c0_i32_0 = arith.constant 0 : i32
    return %arg0, %c0_i32 : i32, i32
  }
  func.func @transform_1(%arg0: i32) -> (i32, i32) {
    %c0_i32 = arith.constant 0 : i32
    %c0_i32_0 = arith.constant 0 : i32
    return %arg0, %c0_i32 : i32, i32
  }
}

</mosaic_0001>

<bundles_post_ra>
// kernel: tpu_custom_call.1
= control target key start
LH: loop header
LB: loop body
LE: loop exit
PB: predicated region body
PF: predicated region fallthrough
CT: control target
= control target key end

     0   :  { %6 = vsyncpa [#allocation3], 0  ;;  %s2295_s0 = inlined_call_operand.hbm [shape: f32[2,1024], index: 0, kind: input, shape index: {}]   ;;  %s2296_s1 = inlined_call_operand.hbm [shape: f32[2,1024], index: 1, kind: output, shape index: {}]  }
   0x1   :  { %7 = vsyncpa [#allocation4], 0  ;;  %s1395_s6 = smov [#allocation2]   ;;  %s1347_s10 = scalar_lea.hbm %s2295_s0, 256 }
   0x2   :  { %s14_s7 = sshll.u32 %s1395_s6, 4  ;;  %p1348_p0 = scmp.ne.s32.totalorder %s2295_s0, %s1347_s10  ;;  %s15_s7 = int_to_ptr.vmem [resolvable:$true] %s14_s7 }
   0x3   :  { %p1351_p1 = scmp.lt.u32.totalorder %s1347_s10, %s2295_s0 }
   0x5   :  { %p1353_p2 = pnand %p1351_p1, %p1348_p0 }
   0x7   :  { %1356 = shalt.err (!%p1353_p2)
}
   0x8   :  { %s1357_s15 = scalar_lea.vmem %s15_s7, 256  ;;  %p1362_p4 = scmp.lt.s32.totalorder %s15_s7, %s15_s7 }
   0x9   :  { %p1358_p3 = scmp.ne.s32.totalorder %s15_s7, %s1357_s15  ;;  %p1363_p5 = scmp.lt.s32.totalorder %s1357_s15, %s1357_s15 }
   0xb   :  { %p1364_p6 = por %p1363_p5, %p1362_p4 }
   0xd   :  { %p1365_p7 = pnand %p1364_p6, %p1358_p3 }
   0xf   :  { %1368 = shalt.err (!%p1365_p7)
}
  0x10   :  { %17 = dma.hbm_to_vmem [thread:$0]  %s2295_s0, 256, %s15_s7, [#allocation3]  }
  0x11   :  { %1391 = dma.done.wait [#allocation3], 256  }
  0x12   :  { %1392 = vsyncadd [#allocation3], 4294967040  ;;  %v23_v0 = vlaneseq  ;;  %s1403_s0 = smov [#allocation5]  }
  0x13   :  { %s1193_s18 = sshll.u32 %s1403_s0, 4  ;;  %s1194_s18 = int_to_ptr.vmem [resolvable:$true] %s1193_s18 }
  0x14   :  { %v1426_v1 = vshrl.u32 %v23_v0, 7  ;;  %v27_v2 = vand.u32 127, %v23_v0  ;;  %s1369_s19 = scalar_lea.vmem %s1194_s18, 256  ;;  %p1374_p9 = scmp.lt.s32.totalorder %s1194_s18, %s1194_s18 }
  0x15   :  { %p1370_p8 = scmp.ne.s32.totalorder %s1194_s18, %s1369_s19  ;;  %p1375_p10 = scmp.lt.s32.totalorder %s1369_s19, %s1369_s19 }
  0x16   :  { %v25_v3 = vmul.u32 1024, %v1426_v1  ;;  %v28_v4 = vadd.s32 128, %v27_v2  ;;  %v29_v5 = vadd.s32 256, %v27_v2  ;;  %v30_v6 = vadd.s32 384, %v27_v2 }
  0x17   :  { %v31_v7 = vadd.s32 512, %v27_v2  ;;  %v32_v8 = vadd.s32 640, %v27_v2  ;;  %v33_v9 = vadd.s32 768, %v27_v2  ;;  %v34_v10 = vadd.s32 896, %v27_v2  ;;  %p1376_p11 = por %p1375_p10, %p1374_p9 }
  0x18   :  { %v35_v11 = vadd.s32 %v27_v2, %v25_v3  ;;  %v36_v12 = vadd.s32 %v28_v4, %v25_v3  ;;  %v37_v13 = vadd.s32 %v29_v5, %v25_v3  ;;  %v38_v14 = vadd.s32 %v30_v6, %v25_v3 }
  0x19   :  { %v39_v15 = vadd.s32 %v31_v7, %v25_v3  ;;  %v40_v16 = vadd.s32 %v32_v8, %v25_v3  ;;  %v41_v17 = vadd.s32 %v33_v9, %v25_v3  ;;  %v42_v18 = vadd.s32 %v34_v10, %v25_v3  ;;  %p1377_p12 = pnand %p1376_p11, %p1370_p8 }
  0x1a   :  { %v44_v19 = vadd.s32 495056326, %v35_v11  ;;  %v45_v20 = vadd.s32 495056326, %v36_v12  ;;  %v46_v21 = vadd.s32 495056326, %v37_v13 }
  0x1b   :  { %v47_v22 = vadd.s32 495056326, %v38_v14  ;;  %v48_v25 = vadd.s32 495056326, %v39_v15  ;;  %v49_v26 = vadd.s32 495056326, %v40_v16 }
  0x1c   :  { %v52_v23 = vshrl.u32 %v44_v19, 16  ;;  %v53_v24 = vshrl.u32 %v45_v20, 16  ;;  %v50_v27 = vadd.s32 495056326, %v41_v17  ;;  %v54_v28 = vshrl.u32 %v46_v21, 16 }
  0x1d   :  { %v51_v31 = vadd.s32 495056326, %v42_v18  ;;  %v55_v32 = vshrl.u32 %v47_v22, 16  ;;  %v56_v35 = vshrl.u32 %v48_v25, 16  ;;  %v57_v36 = vshrl.u32 %v49_v26, 16 }
  0x1e   :  { %v60_v29 = vxor.u32 %v52_v23, %v44_v19  ;;  %v61_v30 = vxor.u32 %v53_v24, %v45_v20  ;;  %v58_v37 = vshrl.u32 %v50_v27, 16  ;;  %v62_v38 = vxor.u32 %v54_v28, %v46_v21 }
  0x1f   :  { %v59_v40 = vshrl.u32 %v51_v31, 16  ;;  %v63_v41 = vxor.u32 %v55_v32, %v47_v22  ;;  %v64_v44 = vxor.u32 %v56_v35, %v48_v25  ;;  %v65_v45 = vxor.u32 %v57_v36, %v49_v26 }
  0x20   :  { %v68_v33 = vmul.u32 2146121005, %v60_v29  ;;  %v69_v34 = vmul.u32 2146121005, %v61_v30  ;;  %v66_v46 = vxor.u32 %v58_v37, %v50_v27 }
  0x21   :  { %v70_v47 = vmul.u32 2146121005, %v62_v38  ;;  %v67_v49 = vxor.u32 %v59_v40, %v51_v31  ;;  %v71_v50 = vmul.u32 2146121005, %v63_v41 }
  0x22   :  { %v76_v39 = vshrl.u32 %v68_v33, 15  ;;  %v77_v42 = vshrl.u32 %v69_v34, 15  ;;  %v72_v53 = vmul.u32 2146121005, %v64_v44  ;;  %v73_v54 = vmul.u32 2146121005, %v65_v45 }
  0x23   :  { %v74_v55 = vmul.u32 2146121005, %v66_v46  ;;  %v78_v56 = vshrl.u32 %v70_v47, 15  ;;  %v75_v58 = vmul.u32 2146121005, %v67_v49  ;;  %v79_v59 = vshrl.u32 %v71_v50, 15 }
  0x24   :  { %v84_v43 = vxor.u32 %v76_v39, %v68_v33  ;;  %v85_v51 = vxor.u32 %v77_v42, %v69_v34  ;;  %v80_v61 = vshrl.u32 %v72_v53, 15  ;;  %v81_v63 = vshrl.u32 %v73_v54, 15 }
  0x25   :  { %v82_v0 = vshrl.u32 %v74_v55, 15  ;;  %v86_v2 = vxor.u32 %v78_v56, %v70_v47  ;;  %v83_v3 = vshrl.u32 %v75_v58, 15  ;;  %v87_v4 = vxor.u32 %v79_v59, %v71_v50 }
  0x26   :  { %v92_v48 = vmul.u32 2221713035, %v84_v43  ;;  %v93_v60 = vmul.u32 2221713035, %v85_v51  ;;  %v88_v6 = vxor.u32 %v80_v61, %v72_v53  ;;  %v89_v8 = vxor.u32 %v81_v63, %v73_v54 }
  0x27   :  { %v90_v9 = vxor.u32 %v82_v0, %v74_v55  ;;  %v94_v10 = vmul.u32 2221713035, %v86_v2  ;;  %v91_v11 = vxor.u32 %v83_v3, %v75_v58  ;;  %v95_v12 = vmul.u32 2221713035, %v87_v4 }
  0x28   :  { %v100_v52 = vshrl.u32 %v92_v48, 16  ;;  %v101_v5 = vshrl.u32 %v93_v60, 16  ;;  %v96_v14 = vmul.u32 2221713035, %v88_v6  ;;  %v97_v16 = vmul.u32 2221713035, %v89_v8 }
  0x29   :  { %v98_v17 = vmul.u32 2221713035, %v90_v9  ;;  %v102_v18 = vshrl.u32 %v94_v10, 16  ;;  %v99_v19 = vmul.u32 2221713035, %v91_v11  ;;  %v103_v21 = vshrl.u32 %v95_v12, 16 }
  0x2a   :  { %v108_v57 = vxor.u32 %v100_v52, %v92_v48  ;;  %v109_v13 = vxor.u32 %v101_v5, %v93_v60  ;;  %v104_v22 = vshrl.u32 %v96_v14, 16  ;;  %v105_v24 = vshrl.u32 %v97_v16, 16 }
  0x2b   :  { %v106_v25 = vshrl.u32 %v98_v17, 16  ;;  %v110_v26 = vxor.u32 %v102_v18, %v94_v10  ;;  %v107_v27 = vshrl.u32 %v99_v19, 16  ;;  %v111_v30 = vxor.u32 %v103_v21, %v95_v12 }
  0x2c   :  { %v116_v62 = vshrl.u32 %v108_v57, 16  ;;  %v117_v20 = vshrl.u32 %v109_v13, 16  ;;  %v112_v31 = vxor.u32 %v104_v22, %v96_v14  ;;  %v113_v33 = vxor.u32 %v105_v24, %v97_v16 }
  0x2d   :  { %v1429_v34 = vxor.u32 %v106_v25, %v98_v17  ;;  %v118_v35 = vshrl.u32 %v110_v26, 16  ;;  %v1431_v36 = vxor.u32 %v107_v27, %v99_v19  ;;  %v119_v39 = vshrl.u32 %v111_v30, 16 }
  0x2e   :  { %v124_v7 = vxor.u32 %v116_v62, %v108_v57  ;;  %v125_v29 = vxor.u32 %v117_v20, %v109_v13  ;;  %v120_v40 = vshrl.u32 %v112_v31, 16  ;;  %v121_v41 = vshrl.u32 %v113_v33, 16 }
  0x2f   :  { %v122_v42 = vshrl.u32 %v1429_v34, 16  ;;  %v126_v43 = vxor.u32 %v118_v35, %v110_v26  ;;  %v123_v45 = vshrl.u32 %v1431_v36, 16  ;;  %v140_v46 = vshrl.u32 %v108_v57, 9 }
  0x30   :  { %v132_v15 = vmul.u32 2221713035, %v124_v7  ;;  %v133_v38 = vmul.u32 2221713035, %v125_v29  ;;  %v127_v49 = vxor.u32 %v119_v39, %v111_v30  ;;  %v128_v50 = vxor.u32 %v120_v40, %v112_v31 }
  0x31   :  { %v129_v51 = vxor.u32 %v121_v41, %v113_v33  ;;  %v130_v52 = vxor.u32 %v122_v42, %v1429_v34  ;;  %v134_v53 = vmul.u32 2221713035, %v126_v43  ;;  %v131_v54 = vxor.u32 %v123_v45, %v1431_v36 }
  0x32   :  { %v172_v23 = vshrl.u32 %v132_v15, 9  ;;  %v173_v47 = vshrl.u32 %v133_v38, 9  ;;  %v141_v55 = vshrl.u32 %v109_v13, 9  ;;  %v148_v56 = vor.u32 1065353216, %v140_v46 }
  0x33   :  { %v135_v60 = vmul.u32 2221713035, %v127_v49  ;;  %v136_v61 = vmul.u32 2221713035, %v128_v50  ;;  %v142_v62 = vshrl.u32 %v110_v26, 9  ;;  %v143_v63 = vshrl.u32 %v111_v30, 9 }
  0x34   :  { %v180_v28 = vor.u32 1065353216, %v172_v23  ;;  %v181_v58 = vor.u32 1065353216, %v173_v47  ;;  %v137_v0 = vmul.u32 2221713035, %v129_v51  ;;  %v138_v57 = vmul.u32 2221713035, %v130_v52 }
  0x35   :  { %v174_v2 = vshrl.u32 %v134_v53, 9  ;;  %v139_v3 = vmul.u32 2221713035, %v131_v54  ;;  %v149_v4 = vor.u32 1065353216, %v141_v55  ;;  %v144_v5 = vshrl.u32 %v112_v31, 9 }
  0x36   :  { %v1202_v32 = vadd.f32 -1.0, %v180_v28  ;;  %v164_v6 = vsub.f32 2.0, %v148_v56  ;;  %v1203_v7 = vadd.f32 -1.0, %v181_v58  ;;  %v145_v9 = vshrl.u32 %v113_v33, 9 }
  0x37   :  { %v150_v10 = vor.u32 1065353216, %v142_v62  ;;  %v151_v11 = vor.u32 1065353216, %v143_v63  ;;  %v175_v12 = vshrl.u32 %v135_v60, 9  ;;  %v176_v13 = vshrl.u32 %v136_v61, 9 }
  0x38   :  { %v1433_v37 = vmul.f32 6.2831855, %v1202_v32  ;;  %v177_v14 = vshrl.u32 %v137_v0, 9  ;;  %v178_v15 = vshrl.u32 %v138_v57, 9  ;;  %v182_v16 = vor.u32 1065353216, %v174_v2 }
  0x39   :  { %v165_v17 = vsub.f32 2.0, %v149_v4  ;;  %v179_v18 = vshrl.u32 %v139_v3, 9  ;;  %v152_v19 = vor.u32 1065353216, %v144_v5  ;;  %1283 = vlog2.f32 %v164_v6 }
  0x3a   :  { %v303_v44 = vand.u32 2139095040, %v1433_v37  ;;  %v1440_v20 = vmul.f32 6.2831855, %v1203_v7  ;;  %v153_v21 = vor.u32 1065353216, %v145_v9  ;;  %v166_v22 = vsub.f32 2.0, %v150_v10 }
  0x3b   :  { %v167_v23 = vsub.f32 2.0, %v151_v11  ;;  %v183_v24 = vor.u32 1065353216, %v175_v12  ;;  %v184_v25 = vor.u32 1065353216, %v176_v13  ;;  %v185_v26 = vor.u32 1065353216, %v177_v14 }
  0x3c   :  { %v304_v48 = vshrl.u32 %v303_v44, 23  ;;  %v186_v27 = vor.u32 1065353216, %v178_v15  ;;  %v1204_v28 = vadd.f32 -1.0, %v182_v16  ;;  %v187_v29 = vor.u32 1065353216, %v179_v18 }
  0x3d   :  { %1285 = vlog2.f32 %v165_v17  ;;  %v300_v30 = vand.u32 2147483647, %v1433_v37  ;;  %v146_v32 = vshrl.u32 %v1429_v34, 9  ;;  %v403_v33 = vand.u32 2147483647, %v1440_v20 }
  0x3e   :  { %v1210_v59 = vadd.s32 4294967169, %v304_v48  ;;  %v406_v35 = vand.u32 2139095040, %v1440_v20  ;;  %v168_v38 = vsub.f32 2.0, %v152_v19  ;;  %v169_v39 = vsub.f32 2.0, %v153_v21 }
  0x3f   :  { %v1205_v40 = vadd.f32 -1.0, %v183_v24  ;;  %1287 = vlog2.f32 %v166_v22  ;;  %v1206_v41 = vadd.f32 -1.0, %v184_v25  ;;  %v1207_v42 = vadd.f32 -1.0, %v185_v26 }
  0x40   :  { %v310_v8 = vadd.s32 1, %v1210_v59  ;;  %v1446_v43 = vmul.f32 6.2831855, %v1204_v28  ;;  %v1208_v45 = vadd.f32 -1.0, %v186_v27  ;;  %v1209_v46 = vadd.f32 -1.0, %v187_v29 }
  0x41   :  { %1289 = vlog2.f32 %v167_v23  ;;  %v307_v47 = vand.u32 8388607, %v300_v30  ;;  %v407_v34 = vshrl.u32 %v406_v35, 23  ;;  %v410_v48 = vand.u32 8388607, %v403_v33 }
  0x42   :  { %vm311_vm0 = vcmp.gt.s32.totalorder %v310_v8, 0  ;;  %v506_v49 = vand.u32 2147483647, %v1446_v43  ;;  %v1454_v51 = vor.u32 1065353216, %v146_v32  ;;  %v1456_v52 = vmul.f32 6.2831855, %v1205_v40 }
  0x43   :  { %v312_v31 = vsel %vm311_vm0, %v310_v8, 0  ;;  %v1284_v53 = vpop.eup %1283  ;;  %1291 = vlog2.f32 %v168_v38  ;;  %v1458_v54 = vmul.f32 6.2831855, %v1206_v41  ;;  %v1460_v55 = vmul.f32 6.2831855, %v1207_v42 }
  0x44   :  { %v314_v44 = vand.u32 31, %v312_v31  ;;  %1293 = vlog2.f32 %v169_v39  ;;  %v1462_v58 = vmul.f32 6.2831855, %v1208_v45  ;;  %v1464_v59 = vmul.f32 6.2831855, %v1209_v46 }
  0x45   :  { %v308_v60 = vor.u32 8388608, %v307_v47  ;;  %v1214_v61 = vadd.s32 4294967169, %v407_v34  ;;  %v411_v62 = vor.u32 8388608, %v410_v48  ;;  %v509_v63 = vand.u32 2139095040, %v1446_v43 }
  0x46   :  { %v315_v56 = vsub.s32 32, %v314_v44  ;;  %v1469_v0 = vand.u32 8388607, %v506_v49  ;;  %v205_v2 = vmul.f32 0.6931472, %v1284_v53  ;;  %v313_v3 = vshrl.u32 %v312_v31, 5 }
  0x47   :  { %v1286_v57 = vpop.eup %1285  ;;  %v1396_v4 = vmov 683565275   ;;  %v1397_v6 = vmov 2475754826   ;;  %v1398_v9 = vmov 2131351028  }
  0x48   :  { %v317_v5 = vshll.u32 %v1396_v4, %v314_v44  ;;  %v320_v7 = vshll.u32 %v1397_v6, %v314_v44  ;;  %v318_v8 = vshrl.u32 %v1397_v6, %v315_v56  ;;  %v321_v10 = vshrl.u32 %v1398_v9, %v315_v56 }
  0x49   :  { %v1399_v11 = vmov 2102212464   ;;  %v1400_v13 = vmov 920167782   ;;  %v1288_v15 = vpop.eup %1287  ;;  %v323_v16 = vshll.u32 %v1398_v9, %v314_v44  ;;  %v1401_v19 = vmov 1326507024  }
  0x4a   :  { %v326_v12 = vshll.u32 %v1399_v11, %v314_v44  ;;  %v327_v14 = vshrl.u32 %v1400_v13, %v315_v56  ;;  %v324_v17 = vshrl.u32 %v1399_v11, %v315_v56  ;;  %v329_v18 = vshll.u32 %v1400_v13, %v314_v44 }
  0x4b   :  { %v330_v21 = vshrl.u32 %v1401_v19, %v315_v56  ;;  %v207_v22 = vmul.f32 0.6931472, %v1286_v57  ;;  %v1481_v23 = vshll.u32 %v308_v60, 8  ;;  %v413_v24 = vadd.s32 1, %v1214_v61  ;;  %v1290_v26 = vpop.eup %1289 }
  0x4c   :  { %v1483_v25 = vshll.u32 %v411_v62, 8  ;;  %v316_v27 = vshrl.u32 %v1396_v4, %v315_v56  ;;  %v510_v28 = vshrl.u32 %v509_v63, 23  ;;  %v514_v29 = vor.u32 8388608, %v1469_v0 }
  0x4d   :  { %v2297_v31 = vand.u32 2147483647, %v1456_v52  ;;  %v209_v32 = vmul.f32 0.6931472, %v1288_v15  ;;  %v319_v35 = vor.u32 %v318_v8, %v317_v5  ;;  %v322_v38 = vor.u32 %v321_v10, %v320_v7  ;;  %v1292_v44 = vpop.eup %1291 }
  0x4e   :  { %v328_v39 = vor.u32 %v327_v14, %v326_v12  ;;  %v1488_v40 = vmul.f32 -2.0, %v205_v2  ;;  %v325_v41 = vor.u32 %v324_v17, %v323_v16  ;;  %v331_v42 = vor.u32 %v330_v21, %v329_v18  ;;  %v1494_v47 = vpop.eup %1293 }
  0x4f   :  { %vm332_vm1 = vcmp.lt.s32.totalorder %v313_v3, 1  ;;  %v1490_v45 = vmul.f32 0.6931472, %v1290_v26  ;;  %v1492_v46 = vmul.f32 -2.0, %v207_v22  ;;  %vm334_vm2 = vcmp.lt.s32.totalorder %v313_v3, 3 }
  0x50   :  { %vm335_vm3 = vcmp.lt.s32.totalorder %v313_v3, 4  ;;  %vm333_vm4 = vcmp.lt.s32.totalorder %v313_v3, 2  ;;  %v336_v34 = vsel %vm332_vm1, %v316_v27, %v319_v35  ;;  %vm414_vm5 = vcmp.gt.s32.totalorder %v413_v24, 0 }
  0x51   :  { %v337_v48 = vsel %vm335_vm3, %v325_v41, 2102212464  ;;  %v340_v56 = vsel %vm332_vm1, %v319_v35, %v322_v38  ;;  %v341_v60 = vsel %vm335_vm3, %v328_v39, 920167782  ;;  %v1218_v61 = vadd.s32 4294967169, %v510_v28 }
  0x52   :  { %v338_v53 = vsel %vm334_vm2, %v322_v38, %v337_v48  ;;  %v1499_v62 = vmul.f32 0.6931472, %v1292_v44  ;;  %v342_v63 = vsel %vm334_vm2, %v325_v41, %v341_v60  ;;  %v344_v57 = vsel %vm332_vm1, %v322_v38, %v325_v41 }
  0x53   :  { %v345_v2 = vsel %vm335_vm3, %v331_v42, 1326507024  ;;  %v339_v5 = vsel %vm333_vm4, %v336_v34, %v338_v53  ;;  %v343_v7 = vsel %vm333_vm4, %v340_v56, %v342_v63  ;;  %v415_v10 = vsel %vm414_vm5, %v413_v24, 0 }
  0x54   :  { %v346_v8 = vsel %vm334_vm2, %v328_v39, %v345_v2  ;;  %v1508_v14 = vmul.u32.u64.low %v1481_v23, %v343_v7  ;;  %v1509_v15 = vmul.u32.u64.high %v1481_v23, %v343_v7, %v1508_v14  ;;  %v416_v16 = vshrl.u32 %v415_v10, 5 }
  0x55   :  { %v347_v12 = vsel %vm333_vm4, %v344_v57, %v346_v8  ;;  %v417_v21 = vand.u32 31, %v415_v10  ;;  %v516_v22 = vadd.s32 1, %v1218_v61  ;;  %v1516_v26 = vmul.f32 -2.0, %v209_v32 }
  0x56   :  { %v1513_v17 = vmul.u32.u64.low %v1481_v23, %v347_v12  ;;  %v1514_v18 = vmul.u32.u64.high %v1481_v23, %v347_v12, %v1513_v17  ;;  %v355_v27 = vmul.u32 %v1481_v23, %v339_v5  ;;  %vm435_vm6 = vcmp.lt.s32.totalorder %v416_v16, 1 }
  0x57   :  { %vm436_vm7 = vcmp.lt.s32.totalorder %v416_v16, 2  ;;  %v418_v3 = vsub.s32 32, %v417_v21  ;;  %v420_v24 = vshll.u32 %v1396_v4, %v417_v21  ;;  %v423_v28 = vshll.u32 %v1397_v6, %v417_v21 }
  0x58   :  { %vm438_vm8 = vcmp.lt.s32.totalorder %v416_v16, 4  ;;  %v358_v35 = vadd.s32 1, %v1509_v15  ;;  %v426_v38 = vshll.u32 %v1398_v9, %v417_v21  ;;  %v429_v39 = vshll.u32 %v1399_v11, %v417_v21 }
  0x59   :  { %vm517_vm9 = vcmp.gt.s32.totalorder %v516_v22, 0  ;;  %vm357_vm10 = vc.u32 %v1514_v18, %v1508_v14  ;;  %v419_v23 = vshrl.u32 %v1396_v4, %v418_v3  ;;  %v421_v32 = vshrl.u32 %v1397_v6, %v418_v3 }
  0x5a   :  { %v432_v41 = vshll.u32 %v1400_v13, %v417_v21  ;;  %v359_v42 = vsel %vm357_vm10, %v358_v35, %v1509_v15  ;;  %v424_v44 = vshrl.u32 %v1398_v9, %v418_v3  ;;  %v427_v34 = vshrl.u32 %v1399_v11, %v418_v3 }
  0x5b   :  { %v430_v48 = vshrl.u32 %v1400_v13, %v418_v3  ;;  %v360_v53 = vadd.s32 %v359_v42, %v355_v27  ;;  %v422_v56 = vor.u32 %v421_v32, %v420_v24  ;;  %v433_v60 = vshrl.u32 %v1401_v19, %v418_v3 }
  0x5c   :  { %v518_v61 = vsel %vm517_vm9, %v516_v22, 0  ;;  %v425_v63 = vor.u32 %v424_v44, %v423_v28  ;;  %v428_v57 = vor.u32 %v427_v34, %v426_v38  ;;  %vm437_vm11 = vcmp.lt.s32.totalorder %v416_v16, 3 }
  0x5d   :  { %v431_v2 = vor.u32 %v430_v48, %v429_v39  ;;  %v361_v5 = vadd.s32 536870912, %v360_v53  ;;  %v434_v7 = vor.u32 %v433_v60, %v432_v41  ;;  %v439_v8 = vsel %vm435_vm6, %v419_v23, %v422_v56 }
  0x5e   :  { %v520_v10 = vand.u32 31, %v518_v61  ;;  %v440_v12 = vsel %vm438_vm8, %v428_v57, 2102212464  ;;  %v443_v15 = vsel %vm435_vm6, %v422_v56, %v425_v63  ;;  %v447_v21 = vsel %vm435_vm6, %v425_v63, %v428_v57 }
  0x5f   :  { %v444_v17 = vsel %vm438_vm8, %v431_v2, 920167782  ;;  %v1539_v27 = vshrl.u32 %v361_v5, 30  ;;  %v441_v22 = vsel %vm437_vm11, %v425_v63, %v440_v12  ;;  %v448_v24 = vsel %vm438_vm8, %v434_v7, 1326507024 }
  0x60   :  { %v445_v3 = vsel %vm437_vm11, %v428_v57, %v444_v17  ;;  %1295 = vrsqrt.f32 %v1488_v40  ;;  %v449_v35 = vsel %vm437_vm11, %v431_v2, %v448_v24  ;;  %v521_v38 = vsub.s32 32, %v520_v10 }
  0x61   :  { %v446_v28 = vsel %vm436_vm7, %v443_v15, %v445_v3  ;;  %v1545_v39 = vmul.f32 0.6931472, %v1494_v47  ;;  %v363_v23 = vshll.u32 %v1539_v27, 30  ;;  %v442_v32 = vsel %vm436_vm7, %v439_v8, %v441_v22 }
  0x62   :  { %v450_v41 = vsel %vm436_vm7, %v447_v21, %v449_v35  ;;  %v1555_v34 = vmul.u32.u64.low %v1483_v25, %v446_v28  ;;  %v1556_v48 = vmul.u32.u64.high %v1483_v25, %v446_v28, %v1555_v34  ;;  %v1560_v56 = vmul.f32 -2.0, %v1490_v45 }
  0x63   :  { %v1551_v42 = vmul.u32.u64.low %v1483_v25, %v450_v41  ;;  %v1552_v44 = vmul.u32.u64.high %v1483_v25, %v450_v41, %v1551_v42  ;;  %v233_v47 = vand.u32 2147483648, %v1488_v40  ;;  %1297 = vrsqrt.f32 %v1492_v46 }
  0x64   :  { %v1564_v60 = vsub.s32 %v360_v53, %v363_v23  ;;  %v523_v16 = vshll.u32 %v1396_v4, %v520_v10  ;;  %v524_v63 = vshrl.u32 %v1397_v6, %v521_v38  ;;  %v526_v57 = vshll.u32 %v1397_v6, %v520_v10 }
  0x65   :  { %v527_v2 = vshrl.u32 %v1398_v9, %v521_v38  ;;  %1299 = vrsqrt.f32 %v1516_v26  ;;  %v458_v45 = vmul.u32 %v1483_v25, %v442_v32  ;;  %v1573_v7 = vshrl.u32 %v518_v61, 5 }
  0x66   :  { %v366_v5 = vsub.s32 0, %v1564_v60  ;;  %vm460_vm12 = vc.u32 %v1552_v44, %v1555_v34  ;;  %v461_v53 = vadd.s32 1, %v1556_v48  ;;  %v529_v8 = vshll.u32 %v1398_v9, %v520_v10 }
  0x67   :  { %v530_v12 = vshrl.u32 %v1399_v11, %v521_v38  ;;  %v1581_v15 = vmul.f32 -2.0, %v1499_v62  ;;  %1301 = vrsqrt.f32 %v1560_v56  ;;  %v522_v25 = vshrl.u32 %v1396_v4, %v521_v38 }
  0x68   :  { %v1211_v17 = vmin.u32 %v366_v5, %v1564_v60  ;;  %v462_v61 = vsel %vm460_vm12, %v461_v53, %v1556_v48  ;;  %v525_v21 = vor.u32 %v524_v63, %v523_v16  ;;  %v528_v22 = vor.u32 %v527_v2, %v526_v57 }
  0x69   :  { %v532_v3 = vshll.u32 %v1399_v11, %v520_v10  ;;  %v463_v28 = vadd.s32 %v462_v61, %v458_v45  ;;  %v533_v35 = vshrl.u32 %v1400_v13, %v521_v38  ;;  %v535_v23 = vshll.u32 %v1400_v13, %v520_v10 }
  0x6a   :  { %v368_v24 = vclz %v1211_v17  ;;  %v1296_v62 = vpop.eup %1295  ;;  %v531_v32 = vor.u32 %v530_v12, %v529_v8  ;;  %v536_v41 = vshrl.u32 %v1401_v19, %v521_v38  ;;  %vm538_vm13 = vcmp.lt.s32.totalorder %v1573_v7, 1 }
  0x6b   :  { %vm540_vm14 = vcmp.lt.s32.totalorder %v1573_v7, 3  ;;  %v464_v48 = vadd.s32 536870912, %v463_v28  ;;  %v534_v16 = vor.u32 %v533_v35, %v532_v3  ;;  %vm541_vm15 = vcmp.lt.s32.totalorder %v1573_v7, 4 }
  0x6c   :  { %v1212_v42 = vadd.s32 4294967294, %v368_v24  ;;  %1303 = vrsqrt.f32 %v1581_v15  ;;  %v537_v63 = vor.u32 %v536_v41, %v535_v23  ;;  %vm539_vm0 = vcmp.lt.s32.totalorder %v1573_v7, 2 }
  0x6d   :  { %v543_v10 = vsel %vm541_vm15, %v531_v32, 2102212464  ;;  %v1298_v57 = vpop.eup %1297  ;;  %v1598_v38 = vshrl.u32 %v464_v48, 30  ;;  %v546_v2 = vsel %vm538_vm13, %v525_v21, %v528_v22  ;;  %v547_v5 = vsel %vm541_vm15, %v534_v16, 920167782 }
  0x6e   :  { %vm1213_vm1 = vcmp.lt.s32.totalorder %v1212_v42, 0  ;;  %v356_v45 = vadd.s32 %v1508_v14, %v1514_v18  ;;  %v542_v8 = vsel %vm538_vm13, %v522_v25, %v525_v21  ;;  %v548_v12 = vsel %vm540_vm14, %v531_v32, %v547_v5 }
  0x6f   :  { %v371_v53 = vsel %vm1213_vm1, 0, %v1212_v42  ;;  %v1300_v17 = vpop.eup %1299  ;;  %vm230_vm2 = vcmp.eq.f32.partialorder %v1488_v40, inf  ;;  %vm237_vm3 = vcmp.eq.f32.partialorder %v1492_v46, inf  ;;  %v466_v3 = vshll.u32 %v1598_v38, 30 }
  0x70   :  { %v376_v61 = vsub.s32 4294967266, %v371_v53  ;;  %v544_v24 = vsel %vm540_vm14, %v528_v22, %v543_v10  ;;  %v550_v14 = vsel %vm538_vm13, %v528_v22, %v531_v32  ;;  %v372_v18 = vsub.s32 32, %v371_v53 }
  0x71   :  { %v549_v25 = vsel %vm539_vm0, %v546_v2, %v548_v12  ;;  %v551_v21 = vsel %vm541_vm15, %v537_v63, 1326507024  ;;  %v554_v35 = vshll.u32 %v514_v29, 8  ;;  %v1302_v23 = vpop.eup %1301  ;;  %v1624_v41 = vmul.f32 -2.0, %v1545_v39 }
  0x72   :  { %v377_v42 = vadd.s32 127, %v376_v61  ;;  %v1626_v48 = vsub.s32 %v463_v28, %v466_v3  ;;  %v552_v22 = vsel %vm540_vm14, %v534_v16, %v551_v21  ;;  %v240_v32 = vand.u32 2147483648, %v1492_v46 }
  0x73   :  { %v553_v10 = vsel %vm539_vm0, %v550_v14, %v552_v22  ;;  %v1633_v2 = vmul.u32.u64.low %v554_v35, %v549_v25  ;;  %v1634_v63 = vmul.u32.u64.high %v554_v35, %v549_v25, %v1633_v2  ;;  %vm232_vm4 = vcmp.eq.f32.partialorder %v1488_v40, 0.0 }
  0x74   :  { %vm244_vm5 = vcmp.eq.f32.partialorder %v1516_v26, inf  ;;  %v247_v0 = vand.u32 2147483648, %v1516_v26  ;;  %v469_v29 = vsub.s32 0, %v1626_v48  ;;  %v545_v39 = vsel %vm539_vm0, %v542_v8, %v544_v24 }
  0x75   :  { %vm239_vm6 = vcmp.eq.f32.partialorder %v1492_v46, 0.0  ;;  %vm246_vm7 = vcmp.eq.f32.partialorder %v1516_v26, 0.0  ;;  %v373_v28 = vshll.u32 %v1564_v60, %v371_v53  ;;  %v374_v16 = vshrl.u32 %v356_v45, %v372_v18 }
  0x76   :  { %v1646_v5 = vmul.u32.u64.low %v554_v35, %v553_v10  ;;  %v1647_v12 = vmul.u32.u64.high %v554_v35, %v553_v10, %v1646_v5  ;;  %vm251_vm8 = vcmp.eq.f32.partialorder %v1560_v56, inf  ;;  %v254_v61 = vand.u32 2147483648, %v1560_v56  ;;  %v1304_v8 = vpop.eup %1303 }
  0x77   :  { %1305 = vrsqrt.f32 %v1624_v41  ;;  %v378_v3 = vshll.u32 %v377_v42, 23  ;;  %v1215_v7 = vmin.u32 %v469_v29, %v1626_v48  ;;  %v229_v24 = vmul.f32 %v1296_v62, %v1488_v40 }
  0x78   :  { %v236_v14 = vmul.f32 %v1298_v57, %v1492_v46  ;;  %v561_v25 = vmul.u32 %v554_v35, %v545_v39  ;;  %v564_v60 = vadd.s32 1, %v1634_v63  ;;  %v243_v45 = vmul.f32 %v1300_v17, %v1516_v26 }
  0x79   :  { %vm258_vm9 = vcmp.eq.f32.partialorder %v1581_v15, inf  ;;  %v471_v53 = vclz %v1215_v7  ;;  %v612_v18 = vand.u32 2139095040, %v1456_v52  ;;  %v261_v21 = vand.u32 2147483648, %v1581_v15 }
  0x7a   :  { %vm302_vm10 = vcmp.lt.s32.totalorder %v1433_v37, 0  ;;  %v375_v22 = vor.u32 %v374_v16, %v373_v28  ;;  %vm563_vm11 = vc.u32 %v1647_v12, %v1633_v2  ;;  %vm253_vm12 = vcmp.eq.f32.partialorder %v1560_v56, 0.0 }
  0x7b   :  { %v379_v62 = vor.u32 4788187, %v378_v3  ;;  %v1216_v57 = vadd.s32 4294967294, %v471_v53  ;;  %v565_v17 = vsel %vm563_vm11, %v564_v60, %v1634_v63  ;;  %v613_v35 = vshrl.u32 %v612_v18, 23 }
  0x7c   :  { %v231_v10 = vsel %vm230_vm2, %v1488_v40, %v229_v24  ;;  %v238_v29 = vsel %vm237_vm3, %v1492_v46, %v236_v14  ;;  %v250_v39 = vmul.f32 %v1302_v23, %v1560_v56  ;;  %vm260_vm13 = vcmp.eq.f32.partialorder %v1581_v15, 0.0 }
  0x7d   :  { %v566_v28 = vadd.s32 %v565_v17, %v561_v25  ;;  %v245_v16 = vsel %vm244_vm5, %v1516_v26, %v243_v45  ;;  %v459_v63 = vadd.s32 %v1555_v34, %v1552_v44  ;;  %vm1217_vm14 = vcmp.lt.s32.totalorder %v1216_v57, 0 }
  0x7e   :  { %v1222_v5 = vadd.s32 4294967169, %v613_v35  ;;  %v257_v3 = vmul.f32 %v1304_v8, %v1581_v15  ;;  %vm1682_vm15 = vcmp.le.f32.partialorder %v300_v30, 0.7853982  ;;  %v386_v23 = vsub.s32 4, %v1539_v27 }
  0x7f   :  { %v474_v24 = vsel %vm1217_vm14, 0, %v1216_v57  ;;  %v567_v14 = vadd.s32 536870912, %v566_v28  ;;  %v380_v25 = vand.u32 2147483647, %v379_v62  ;;  %v382_v60 = vcvt.s32.f32 %v375_v22 }
  0x80   :  { %v475_v45 = vsub.s32 32, %v474_v24  ;;  %v479_v53 = vsub.s32 4294967266, %v474_v24  ;;  %v234_v44 = vsel %vm232_vm4, %v233_v47, %v231_v10  ;;  %v476_v34 = vshll.u32 %v1626_v48, %v474_v24 }
  0x81   :  { %v1692_v8 = vshrl.u32 %v567_v14, 30  ;;  %v619_v30 = vadd.s32 1, %v1222_v5  ;;  %v1306_v18 = vpop.eup %1305  ;;  %v241_v57 = vsel %vm239_vm6, %v240_v32, %v238_v29  ;;  %v248_v22 = vsel %vm246_vm7, %v247_v0, %v245_v16 }
  0x82   :  { %v477_v62 = vshrl.u32 %v459_v63, %v475_v45  ;;  %v480_v17 = vadd.s32 127, %v479_v53  ;;  %v252_v40 = vsel %vm251_vm8, %v1560_v56, %v250_v39  ;;  %v259_v47 = vsel %vm258_vm9, %v1581_v15, %v257_v3 }
  0x83   :  { %vm405_vm0 = vcmp.lt.s32.totalorder %v1440_v20, 0  ;;  %v569_v48 = vshll.u32 %v1692_v8, 30  ;;  %vm620_vm1 = vcmp.gt.s32.totalorder %v619_v30, 0  ;;  %v383_v46 = vmul.f32 %v382_v60, %v380_v25 }
  0x84   :  { %v1711_v26 = vsel %vm302_vm10, %v386_v23, %v1539_v27  ;;  %v481_v32 = vshll.u32 %v480_v17, 23  ;;  %v621_v0 = vsel %vm620_vm1, %v619_v30, 0  ;;  %v478_v35 = vor.u32 %v477_v62, %v476_v34 }
  0x85   :  { %v1713_v10 = vsub.s32 %v566_v28, %v569_v48  ;;  %v623_v29 = vand.u32 31, %v621_v0  ;;  %v715_v39 = vand.u32 2139095040, %v1458_v54  ;;  %v1717_v16 = vmul.f32 %v1306_v18, %v1624_v41 }
  0x86   :  { %v1719_v63 = vmul.f32 0.1, %v234_v44  ;;  %v1721_v5 = vmul.f32 0.1, %v241_v57  ;;  %v482_v3 = vor.u32 4788187, %v481_v32  ;;  %v1727_v27 = vsel %vm253_vm12, %v254_v61, %v252_v40 }
  0x87   :  { %v1729_v23 = vmul.f32 0.1, %v248_v22  ;;  %v572_v28 = vsub.s32 0, %v1713_v10  ;;  %v624_v24 = vsub.s32 32, %v623_v29  ;;  %v1734_v14 = vsel %vm260_vm13, %v261_v21, %v259_v47 }
  0x88   :  { %v389_v25 = vsel %vm1682_vm15, 0, %v1711_v26  ;;  %v489_v60 = vsub.s32 4, %v1598_v38  ;;  %v616_v56 = vand.u32 8388607, %v2297_v31  ;;  %v384_v61 = vxor.u32 2147483648, %v383_v46 }
  0x89   :  { %v485_v45 = vcvt.s32.f32 %v478_v35  ;;  %v1219_v53 = vmin.u32 %v572_v28, %v1713_v10  ;;  %v716_v44 = vshrl.u32 %v715_v39, 23  ;;  %v483_v34 = vand.u32 2147483647, %v482_v3 }
  0x8a   :  { %v626_v30 = vshll.u32 %v1396_v4, %v623_v29  ;;  %v629_v15 = vshll.u32 %v1397_v6, %v623_v29  ;;  %v635_v21 = vshll.u32 %v1399_v11, %v623_v29  ;;  %v627_v57 = vshrl.u32 %v1397_v6, %v624_v24 }
  0x8b   :  { %v574_v18 = vclz %v1219_v53  ;;  %v630_v22 = vshrl.u32 %v1398_v9, %v624_v24  ;;  %v636_v62 = vshrl.u32 %v1400_v13, %v624_v24  ;;  %v1752_v17 = vsel %vm405_vm0, %v489_v60, %v1598_v38 }
  0x8c   :  { %v622_v40 = vshrl.u32 %v621_v0, 5  ;;  %v632_v47 = vshll.u32 %v1398_v9, %v623_v29  ;;  %v633_v48 = vshrl.u32 %v1399_v11, %v624_v24  ;;  %v617_v35 = vor.u32 8388608, %v616_v56 }
  0x8d   :  { %v1220_v32 = vadd.s32 4294967294, %v574_v18  ;;  %v638_v39 = vshll.u32 %v1400_v13, %v623_v29  ;;  %v639_v3 = vshrl.u32 %v1401_v19, %v624_v24  ;;  %vm265_vm2 = vcmp.eq.f32.partialorder %v1624_v41, inf }
  0x8e   :  { %v385_v28 = vsel %vm302_vm10, %v384_v61, %v383_v46  ;;  %v486_v53 = vmul.f32 %v485_v45, %v483_v34  ;;  %v562_v38 = vadd.s32 %v1633_v2, %v1647_v12  ;;  %v1226_v0 = vadd.s32 4294967169, %v716_v44 }
  0x8f   :  { %vm1221_vm3 = vcmp.lt.s32.totalorder %v1220_v32, 0  ;;  %v628_v60 = vor.u32 %v627_v57, %v626_v30  ;;  %v631_v42 = vor.u32 %v630_v22, %v629_v15  ;;  %v637_v50 = vor.u32 %v636_v62, %v635_v21 }
  0x90   :  { %vm1765_vm4 = vcmp.le.f32.partialorder %v403_v33, 0.7853982  ;;  %v577_v56 = vsel %vm1221_vm3, 0, %v1220_v32  ;;  %v625_v18 = vshrl.u32 %v1396_v4, %v624_v24  ;;  %v634_v31 = vor.u32 %v633_v48, %v632_v47 }
  0x91   :  { %vm641_vm5 = vcmp.lt.s32.totalorder %v622_v40, 1  ;;  %v388_v2 = vsel %vm1682_vm15, %v1433_v37, %v385_v28  ;;  %v640_v12 = vor.u32 %v639_v3, %v638_v39  ;;  %vm643_vm6 = vcmp.lt.s32.totalorder %v622_v40, 3 }
  0x92   :  { %v657_v46 = vshll.u32 %v617_v35, 8  ;;  %v487_v61 = vxor.u32 2147483648, %v486_v53  ;;  %vm642_vm7 = vcmp.lt.s32.totalorder %v622_v40, 2  ;;  %vm644_vm8 = vcmp.lt.s32.totalorder %v622_v40, 4 }
  0x93   :  { %v722_v45 = vadd.s32 1, %v1226_v0  ;;  %v582_v33 = vsub.s32 4294967266, %v577_v56  ;;  %v646_v44 = vsel %vm644_vm8, %v634_v31, 2102212464  ;;  %v649_v34 = vsel %vm641_vm5, %v628_v60, %v631_v42 }
  0x94   :  { %v650_v30 = vsel %vm644_vm8, %v637_v50, 920167782  ;;  %v645_v24 = vsel %vm641_vm5, %v625_v18, %v628_v60  ;;  %v647_v15 = vsel %vm643_vm6, %v631_v42, %v646_v44  ;;  %v653_v57 = vsel %vm641_vm5, %v631_v42, %v634_v31 }
  0x95   :  { %v651_v21 = vsel %vm643_vm6, %v634_v31, %v650_v30  ;;  %1307 = vcosq.f32 %v388_v2  ;;  %v654_v62 = vsel %vm644_vm8, %v640_v12, 1326507024  ;;  %v712_v47 = vand.u32 2147483647, %v1458_v54 }
  0x96   :  { %v652_v22 = vsel %vm642_vm7, %v649_v34, %v651_v21  ;;  %v578_v48 = vsub.s32 32, %v577_v56  ;;  %v655_v32 = vsel %vm643_vm6, %v637_v50, %v654_v62  ;;  %v583_v3 = vadd.s32 127, %v582_v33 }
  0x97   :  { %v1781_v35 = vmul.u32.u64.low %v657_v46, %v652_v22  ;;  %v1782_v39 = vmul.u32.u64.high %v657_v46, %v652_v22, %v1781_v35  ;;  %v648_v28 = vsel %vm642_vm7, %v645_v24, %v647_v15  ;;  %v656_v0 = vsel %vm642_vm7, %v653_v57, %v655_v32 }
  0x98   :  { %vm723_vm9 = vcmp.gt.s32.totalorder %v722_v45, 0  ;;  %v488_v31 = vsel %vm405_vm0, %v487_v61, %v486_v53  ;;  %v1789_v42 = vmul.u32.u64.low %v657_v46, %v656_v0  ;;  %v1790_v60 = vmul.u32.u64.high %v657_v46, %v656_v0, %v1789_v42 }
  0x99   :  { %v724_v18 = vsel %vm723_vm9, %v722_v45, 0  ;;  %v1796_v50 = vsel %vm265_vm2, %v1624_v41, %v1717_v16  ;;  %1309 = vsinq.f32 %v388_v2  ;;  %v492_v40 = vsel %vm1765_vm4, 0, %v1752_v17 }
  0x9a   :  { %v726_v12 = vand.u32 31, %v724_v18  ;;  %v579_v33 = vshll.u32 %v1713_v10, %v577_v56  ;;  %v580_v44 = vshrl.u32 %v562_v38, %v578_v48  ;;  %v664_v53 = vmul.u32 %v657_v46, %v648_v28 }
  0x9b   :  { %v667_v61 = vadd.s32 1, %v1782_v39  ;;  %v1807_v45 = vand.u32 3, %v389_v25  ;;  %v491_v16 = vsel %vm1765_vm4, %v1440_v20, %v488_v31  ;;  %v584_v2 = vshll.u32 %v583_v3, 23 }
  0x9c   :  { %v727_v34 = vsub.s32 32, %v726_v12  ;;  %v1813_v17 = vmul.f32 0.1, %v1727_v27  ;;  %v1815_v10 = vand.u32 3, %v492_v40  ;;  %vm666_vm10 = vc.u32 %v1790_v60, %v1781_v35 }
  0x9d   :  { %v719_v7 = vand.u32 8388607, %v712_v47  ;;  %v668_v26 = vsel %vm666_vm10, %v667_v61, %v1782_v39  ;;  %v729_v25 = vshll.u32 %v1396_v4, %v726_v12  ;;  %v732_v29 = vshll.u32 %v1397_v6, %v726_v12 }
  0x9e   :  { %v730_v38 = vshrl.u32 %v1397_v6, %v727_v34  ;;  %1311 = vcosq.f32 %v491_v16  ;;  %v581_v56 = vor.u32 %v580_v44, %v579_v33  ;;  %v669_v27 = vadd.s32 %v668_v26, %v664_v53 }
  0x9f   :  { %v733_v46 = vshrl.u32 %v1398_v9, %v727_v34  ;;  %v1308_v30 = vpop.eup %1307  ;;  %vm398_vm11 = vcmp.eq.s32.totalorder %v1807_v45, 2  ;;  %v585_v24 = vor.u32 4788187, %v584_v2  ;;  %v725_v15 = vshrl.u32 %v724_v18, 5 }
  0xa0   :  { %v735_v21 = vshll.u32 %v1398_v9, %v726_v12  ;;  %v736_v57 = vshrl.u32 %v1399_v11, %v727_v34  ;;  %vm395_vm12 = vcmp.eq.s32.totalorder %v1807_v45, 0  ;;  %1313 = vsinq.f32 %v491_v16 }
  0xa1   :  { %v592_v22 = vsub.s32 4, %v1692_v8  ;;  %v670_v62 = vadd.s32 536870912, %v669_v27  ;;  %v720_v48 = vor.u32 8388608, %v719_v7  ;;  %vm508_vm13 = vcmp.lt.s32.totalorder %v1446_v43, 0 }
  0xa2   :  { %v731_v32 = vor.u32 %v730_v38, %v729_v25  ;;  %v734_v39 = vor.u32 %v733_v46, %v732_v29  ;;  %v738_v3 = vshll.u32 %v1399_v11, %v726_v12  ;;  %v739_v28 = vshrl.u32 %v1400_v13, %v727_v34 }
  0xa3   :  { %v588_v0 = vcvt.s32.f32 %v581_v56  ;;  %v1834_v31 = vshrl.u32 %v670_v62, 30  ;;  %v741_v42 = vshll.u32 %v1400_v13, %v726_v12  ;;  %v742_v18 = vshrl.u32 %v1401_v19, %v727_v34  ;;  %v1310_v40 = vpop.eup %1309 }
  0xa4   :  { %v586_v33 = vand.u32 2147483647, %v585_v24  ;;  %v737_v44 = vor.u32 %v736_v57, %v735_v21  ;;  %v740_v53 = vor.u32 %v739_v28, %v738_v3  ;;  %vm744_vm14 = vcmp.lt.s32.totalorder %v725_v15, 1 }
  0xa5   :  { %v672_v61 = vshll.u32 %v1834_v31, 30  ;;  %v728_v16 = vshrl.u32 %v1396_v4, %v727_v34  ;;  %v743_v2 = vor.u32 %v742_v18, %v741_v42  ;;  %vm746_vm15 = vcmp.lt.s32.totalorder %v725_v15, 3 }
  0xa6   :  { %vm1842_vm0 = vcmp.le.f32.partialorder %v506_v49, 0.7853982  ;;  %vm745_vm1 = vcmp.lt.s32.totalorder %v725_v15, 2  ;;  %vm747_vm2 = vcmp.lt.s32.totalorder %v725_v15, 4  ;;  %v752_v12 = vsel %vm744_vm14, %v731_v32, %v734_v39 }
  0xa7   :  { %v760_v26 = vshll.u32 %v720_v48, 8  ;;  %v399_v25 = vxor.u32 2147483648, %v1308_v30  ;;  %v1847_v38 = vsub.s32 %v669_v27, %v672_v61  ;;  %v749_v29 = vsel %vm747_vm2, %v737_v44, 2102212464 }
  0xa8   :  { %v753_v56 = vsel %vm747_vm2, %v740_v53, 920167782  ;;  %v396_v46 = vxor.u32 2147483648, %v1310_v40  ;;  %v589_v34 = vmul.f32 %v588_v0, %v586_v33  ;;  %v757_v21 = vsel %vm747_vm2, %v743_v2, 1326507024  ;;  %v1312_v57 = vpop.eup %1311 }
  0xa9   :  { %v754_v24 = vsel %vm746_vm15, %v737_v44, %v753_v56  ;;  %v675_v49 = vsub.s32 0, %v1847_v38  ;;  %v748_v62 = vsel %vm744_vm14, %v728_v16, %v731_v32  ;;  %v756_v28 = vsel %vm744_vm14, %v734_v39, %v737_v44 }
  0xaa   :  { %v755_v3 = vsel %vm745_vm1, %v752_v12, %v754_v24  ;;  %v750_v48 = vsel %vm746_vm15, %v734_v39, %v749_v29  ;;  %v758_v27 = vsel %vm746_vm15, %v740_v53, %v757_v21  ;;  %v1314_v0 = vpop.eup %1313  ;;  %vm392_vm3 = vweird.f32 %v1433_v37 }
  0xab   :  { %v1856_v42 = vmul.u32.u64.low %v760_v26, %v755_v3  ;;  %v1857_v18 = vmul.u32.u64.high %v760_v26, %v755_v3, %v1856_v42  ;;  %vm394_vm4 = vcmp.lt.s32.totalorder %v1807_v45, 2  ;;  %v400_v32 = vsel %vm398_vm11, %v399_v25, %v1310_v40 }
  0xac   :  { %v593_v33 = vsel %vm508_vm13, %v592_v22, %v1692_v8  ;;  %v1223_v39 = vmin.u32 %v675_v49, %v1847_v38  ;;  %v397_v44 = vsel %vm395_vm12, %v1308_v30, %v396_v46  ;;  %vm497_vm5 = vcmp.lt.s32.totalorder %v1815_v10, 2 }
  0xad   :  { %v590_v53 = vxor.u32 2147483648, %v589_v34  ;;  %v759_v61 = vsel %vm745_vm1, %v756_v28, %v758_v27  ;;  %v818_v16 = vand.u32 2139095040, %v1460_v55  ;;  %v751_v12 = vsel %vm745_vm1, %v748_v62, %v750_v48 }
  0xae   :  { %v677_v2 = vclz %v1223_v39  ;;  %v1874_v40 = vmul.u32.u64.low %v760_v26, %v759_v61  ;;  %v1875_v25 = vmul.u32.u64.high %v760_v26, %v759_v61, %v1874_v40  ;;  %vm498_vm6 = vcmp.eq.s32.totalorder %v1815_v10, 0 }
  0xaf   :  { %v502_v8 = vxor.u32 2147483648, %v1312_v57  ;;  %v770_v22 = vadd.s32 1, %v1857_v18  ;;  %v819_v29 = vshrl.u32 %v818_v16, 23  ;;  %v499_v30 = vxor.u32 2147483648, %v1314_v0 }
  0xb0   :  { %vm501_vm7 = vcmp.eq.s32.totalorder %v1815_v10, 2  ;;  %v595_v56 = vsel %vm1842_vm0, 0, %v593_v33  ;;  %vm611_vm8 = vcmp.lt.s32.totalorder %v1456_v52, 0  ;;  %v1224_v46 = vadd.s32 4294967294, %v677_v2 }
  0xb1   :  { %v401_v15 = vsel %vm394_vm4, %v397_v44, %v400_v32  ;;  %v767_v24 = vmul.u32 %v760_v26, %v751_v12  ;;  %v815_v21 = vand.u32 2147483647, %v1460_v55  ;;  %v1230_v49 = vadd.s32 4294967169, %v819_v29 }
  0xb2   :  { %v591_v62 = vsel %vm508_vm13, %v590_v53, %v589_v34  ;;  %v665_v3 = vadd.s32 %v1781_v35, %v1790_v60  ;;  %vm1225_vm9 = vcmp.lt.s32.totalorder %v1224_v46, 0  ;;  %vm769_vm10 = vc.u32 %v1875_v25, %v1856_v42 }
  0xb3   :  { %v503_v28 = vsel %vm501_vm7, %v502_v8, %v1314_v0  ;;  %v680_v48 = vsel %vm1225_vm9, 0, %v1224_v46  ;;  %v771_v27 = vsel %vm769_vm10, %v770_v22, %v1857_v18  ;;  %v825_v45 = vadd.s32 1, %v1230_v49 }
  0xb4   :  { %v500_v26 = vsel %vm498_vm6, %v1312_v57, %v499_v30  ;;  %v681_v32 = vsub.s32 32, %v680_v48  ;;  %v682_v33 = vshll.u32 %v1847_v38, %v680_v48  ;;  %v685_v39 = vsub.s32 4294967266, %v680_v48 }
  0xb5   :  { %v594_v35 = vsel %vm1842_vm0, %v1446_v43, %v591_v62  ;;  %v2304_v60 = vand.u32 2147483647, %v1456_v52  ;;  %v695_v18 = vsub.s32 4, %v1834_v31  ;;  %v772_v0 = vadd.s32 %v771_v27, %v767_v24 }
  0xb6   :  { %vm826_vm12 = vcmp.gt.s32.totalorder %v825_v45, 0  ;;  %v683_v44 = vshrl.u32 %v665_v3, %v681_v32  ;;  %v686_v57 = vadd.s32 127, %v685_v39  ;;  %v822_v38 = vand.u32 8388607, %v815_v21 }
  0xb7   :  { %vm1901_vm11 = vcmp.le.f32.partialorder %v2304_v60, 0.7853982  ;;  %v827_v53 = vsel %vm826_vm12, %v825_v45, 0  ;;  %v1910_v7 = vsel %vm392_vm3, nan, %v401_v15  ;;  %v1912_v61 = vand.u32 3, %v595_v56 }
  0xb8   :  { %v773_v16 = vadd.s32 536870912, %v772_v0  ;;  %v829_v2 = vand.u32 31, %v827_v53  ;;  %v1916_v12 = vsel %vm497_vm5, %v500_v26, %v503_v28  ;;  %1315 = vcosq.f32 %v594_v35 }
  0xb9   :  { %v684_v40 = vor.u32 %v683_v44, %v682_v33  ;;  %v687_v8 = vshll.u32 %v686_v57, 23  ;;  %v1921_v22 = vsel %vm611_vm8, %v695_v18, %v1834_v31  ;;  %v921_v30 = vand.u32 2139095040, %v1462_v58 }
  0xba   :  { %v1923_v29 = vshrl.u32 %v773_v16, 30  ;;  %v830_v37 = vsub.s32 32, %v829_v2  ;;  %v823_v15 = vor.u32 8388608, %v822_v38  ;;  %v828_v24 = vshrl.u32 %v827_v53, 5 }
  0xbb   :  { %v688_v56 = vor.u32 4788187, %v687_v8  ;;  %v691_v46 = vcvt.s32.f32 %v684_v40  ;;  %v832_v49 = vshll.u32 %v1396_v4, %v829_v2  ;;  %v835_v3 = vshll.u32 %v1397_v6, %v829_v2 }
  0xbc   :  { %v775_v10 = vshll.u32 %v1923_v29, 30  ;;  %v833_v62 = vshrl.u32 %v1397_v6, %v830_v37  ;;  %v836_v31 = vshrl.u32 %v1398_v9, %v830_v37  ;;  %v841_v48 = vshll.u32 %v1399_v11, %v829_v2 }
  0xbd   :  { %v689_v28 = vand.u32 2147483647, %v688_v56  ;;  %v842_v27 = vshrl.u32 %v1400_v13, %v830_v37  ;;  %v838_v26 = vshll.u32 %v1398_v9, %v829_v2  ;;  %v839_v32 = vshrl.u32 %v1399_v11, %v830_v37 }
  0xbe   :  { %v1933_v45 = vsub.s32 %v772_v0, %v775_v10  ;;  %v922_v33 = vshrl.u32 %v921_v30, 23  ;;  %1317 = vsinq.f32 %v594_v35  ;;  %v698_v60 = vsel %vm1901_vm11, 0, %v1921_v22 }
  0xbf   :  { %v692_v39 = vmul.f32 %v691_v46, %v689_v28  ;;  %v844_v18 = vshll.u32 %v1400_v13, %v829_v2  ;;  %v834_v57 = vor.u32 %v833_v62, %v832_v49  ;;  %v837_v38 = vor.u32 %v836_v31, %v835_v3 }
  0xc0   :  { %v778_v44 = vsub.s32 0, %v1933_v45  ;;  %v845_v0 = vshrl.u32 %v1401_v19, %v830_v37  ;;  %v831_v16 = vshrl.u32 %v1396_v4, %v830_v37  ;;  %v843_v40 = vor.u32 %v842_v27, %v841_v48 }
  0xc1   :  { %v693_v53 = vxor.u32 2147483648, %v692_v39  ;;  %vm847_vm13 = vcmp.lt.s32.totalorder %v828_v24, 1  ;;  %v840_v8 = vor.u32 %v839_v32, %v838_v26  ;;  %v1945_v30 = vshll.u32 %v823_v15, 8 }
  0xc2   :  { %v1227_v35 = vmin.u32 %v778_v44, %v1933_v45  ;;  %v1234_v56 = vadd.s32 4294967169, %v922_v33  ;;  %v1947_v22 = vpop.eup %1315  ;;  %v846_v2 = vor.u32 %v845_v0, %v844_v18  ;;  %vm848_vm14 = vcmp.lt.s32.totalorder %v828_v24, 2 }
  0xc3   :  { %vm849_vm15 = vcmp.lt.s32.totalorder %v828_v24, 3  ;;  %vm850_vm0 = vcmp.lt.s32.totalorder %v828_v24, 4  ;;  %v694_v46 = vsel %vm611_vm8, %v693_v53, %v692_v39  ;;  %v855_v37 = vsel %vm847_vm13, %v834_v57, %v837_v38 }
  0xc4   :  { %v780_v10 = vclz %v1227_v35  ;;  %v852_v49 = vsel %vm850_vm0, %v840_v8, 2102212464  ;;  %v768_v62 = vadd.s32 %v1856_v42, %v1875_v25  ;;  %v851_v15 = vsel %vm847_vm13, %v831_v16, %v834_v57 }
  0xc5   :  { %v856_v3 = vsel %vm850_vm0, %v843_v40, 920167782  ;;  %v918_v28 = vand.u32 2147483647, %v1462_v58  ;;  %v853_v48 = vsel %vm849_vm15, %v837_v38, %v852_v49  ;;  %v859_v26 = vsel %vm847_vm13, %v837_v38, %v840_v8 }
  0xc6   :  { %v1228_v31 = vadd.s32 4294967294, %v780_v10  ;;  %v857_v27 = vsel %vm849_vm15, %v840_v8, %v856_v3  ;;  %v697_v32 = vsel %vm1901_vm11, %v1456_v52, %v694_v46  ;;  %v860_v39 = vsel %vm850_vm0, %v846_v2, 1326507024 }
  0xc7   :  { %v858_v33 = vsel %vm848_vm14, %v855_v37, %v857_v27  ;;  %v928_v42 = vadd.s32 1, %v1234_v56  ;;  %v861_v25 = vsel %vm849_vm15, %v843_v40, %v860_v39  ;;  %v854_v38 = vsel %vm848_vm14, %v851_v15, %v853_v48 }
  0xc8   :  { %vm1229_vm1 = vcmp.lt.s32.totalorder %v1228_v31, 0  ;;  %v1965_v18 = vmul.u32.u64.low %v1945_v30, %v858_v33  ;;  %v1966_v44 = vmul.u32.u64.high %v1945_v30, %v858_v33, %v1965_v18  ;;  %v1318_v57 = vpop.eup %1317  ;;  %v862_v53 = vsel %vm848_vm14, %v859_v26, %v861_v25 }
  0xc9   :  { %v783_v0 = vsel %vm1229_vm1, 0, %v1228_v31  ;;  %vm929_vm2 = vcmp.gt.s32.totalorder %v928_v42, 0  ;;  %vm601_vm3 = vcmp.eq.s32.totalorder %v1912_v61, 0  ;;  %vm604_vm4 = vcmp.eq.s32.totalorder %v1912_v61, 2 }
  0xca   :  { %v784_v34 = vsub.s32 32, %v783_v0  ;;  %v785_v16 = vshll.u32 %v1933_v45, %v783_v0  ;;  %v788_v40 = vsub.s32 4294967266, %v783_v0  ;;  %v930_v35 = vsel %vm929_vm2, %v928_v42, 0 }
  0xcb   :  { %v1974_v8 = vand.u32 3, %v698_v60  ;;  %v1977_v56 = vmul.u32.u64.low %v1945_v30, %v862_v53  ;;  %v1978_v2 = vmul.u32.u64.high %v1945_v30, %v862_v53, %v1977_v56  ;;  %v932_v46 = vand.u32 31, %v930_v35 }
  0xcc   :  { %1319 = vcosq.f32 %v697_v32  ;;  %v786_v24 = vshrl.u32 %v768_v62, %v784_v34  ;;  %v789_v10 = vadd.s32 127, %v788_v40  ;;  %v873_v49 = vadd.s32 1, %v1966_v44 }
  0xcd   :  { %v605_v37 = vxor.u32 2147483648, %v1947_v22  ;;  %1321 = vsinq.f32 %v697_v32  ;;  %vm714_vm5 = vcmp.lt.s32.totalorder %v1458_v54, 0  ;;  %v870_v45 = vmul.u32 %v1945_v30, %v854_v38 }
  0xce   :  { %v933_v15 = vsub.s32 32, %v932_v46  ;;  %vm600_vm6 = vcmp.lt.s32.totalorder %v1912_v61, 2  ;;  %v602_v60 = vxor.u32 2147483648, %v1318_v57  ;;  %v787_v3 = vor.u32 %v786_v24, %v785_v16 }
  0xcf   :  { %v790_v31 = vshll.u32 %v789_v10, 23  ;;  %v925_v48 = vand.u32 8388607, %v918_v28  ;;  %vm872_vm7 = vc.u32 %v1978_v2, %v1965_v18  ;;  %v935_v62 = vshll.u32 %v1396_v4, %v932_v46 }
  0xd0   :  { %v938_v27 = vshll.u32 %v1397_v6, %v932_v46  ;;  %v944_v26 = vshll.u32 %v1399_v11, %v932_v46  ;;  %vm1994_vm8 = vcmp.le.f32.partialorder %v712_v47, 0.7853982  ;;  %v794_v33 = vcvt.s32.f32 %v787_v3 }
  0xd1   :  { %v791_v32 = vor.u32 4788187, %v790_v31  ;;  %v874_v39 = vsel %vm872_vm7, %v873_v49, %v1966_v44  ;;  %v936_v42 = vshrl.u32 %v1397_v6, %v933_v15  ;;  %v798_v25 = vsub.s32 4, %v1923_v29 }
  0xd2   :  { %v875_v0 = vadd.s32 %v874_v39, %v870_v45  ;;  %v2001_v38 = vshrl.u32 %v930_v35, 5  ;;  %v939_v53 = vshrl.u32 %v1398_v9, %v933_v15  ;;  %vm707_vm9 = vcmp.eq.s32.totalorder %v1974_v8, 2 }
  0xd3   :  { %v792_v34 = vand.u32 2147483647, %v791_v32  ;;  %v941_v47 = vshll.u32 %v1398_v9, %v932_v46  ;;  %v942_v16 = vshrl.u32 %v1399_v11, %v933_v15  ;;  %v945_v40 = vshrl.u32 %v1400_v13, %v933_v15 }
  0xd4   :  { %vm704_vm10 = vcmp.eq.s32.totalorder %v1974_v8, 0  ;;  %v876_v44 = vadd.s32 536870912, %v875_v0  ;;  %v926_v56 = vor.u32 8388608, %v925_v48  ;;  %v947_v24 = vshll.u32 %v1400_v13, %v932_v46 }
  0xd5   :  { %v948_v35 = vshrl.u32 %v1401_v19, %v933_v15  ;;  %v795_v10 = vmul.f32 %v794_v33, %v792_v34  ;;  %v937_v49 = vor.u32 %v936_v42, %v935_v62  ;;  %v940_v45 = vor.u32 %v939_v53, %v938_v27 }
  0xd6   :  { %v946_v3 = vor.u32 %v945_v40, %v944_v26  ;;  %v603_v31 = vsel %vm601_vm3, %v1947_v22, %v602_v60  ;;  %v606_v32 = vsel %vm604_vm4, %v605_v37, %v1318_v57  ;;  %v2016_v39 = vshrl.u32 %v876_v44, 30  ;;  %v1320_v48 = vpop.eup %1319 }
  0xd7   :  { %vm950_vm11 = vcmp.lt.s32.totalorder %v2001_v38, 1  ;;  %vm495_vm12 = vweird.f32 %v1440_v20  ;;  %v796_v46 = vxor.u32 2147483648, %v795_v10  ;;  %v799_v62 = vsel %vm714_vm5, %v798_v25, %v1923_v29  ;;  %v1322_v26 = vpop.eup %1321 }
  0xd8   :  { %v943_v27 = vor.u32 %v942_v16, %v941_v47  ;;  %vm953_vm13 = vcmp.lt.s32.totalorder %v2001_v38, 4  ;;  %vm598_vm14 = vweird.f32 %v1446_v43  ;;  %v878_v22 = vshll.u32 %v2016_v39, 30 }
  0xd9   :  { %v949_v57 = vor.u32 %v948_v35, %v947_v24  ;;  %vm952_vm15 = vcmp.lt.s32.totalorder %v2001_v38, 3  ;;  %v2027_v37 = vshll.u32 %v926_v56, 8  ;;  %vm703_vm0 = vcmp.lt.s32.totalorder %v1974_v8, 2 }
  0xda   :  { %v797_v60 = vsel %vm714_vm5, %v796_v46, %v795_v10  ;;  %vm951_vm1 = vcmp.lt.s32.totalorder %v2001_v38, 2  ;;  %v958_v29 = vsel %vm950_vm11, %v937_v49, %v940_v45  ;;  %v959_v33 = vsel %vm953_vm13, %v946_v3, 920167782  ;;  %v1127_v38 = vld [vmem:[#allocation2] sm:$0xff] }
  0xdb   :  { %v607_v42 = vsel %vm600_vm6, %v603_v31, %v606_v32  ;;  %v708_v25 = vxor.u32 2147483648, %v1320_v48  ;;  %v2039_v53 = vsub.s32 %v875_v0, %v878_v22  ;;  %v934_v34 = vshrl.u32 %v1396_v4, %v933_v15 }
  0xdc   :  { %v705_v47 = vxor.u32 2147483648, %v1322_v26  ;;  %v801_v16 = vsel %vm1994_vm8, 0, %v799_v62  ;;  %v955_v40 = vsel %vm953_vm13, %v943_v27, 2102212464  ;;  %v960_v44 = vsel %vm952_vm15, %v943_v27, %v959_v33 }
  0xdd   :  { %v800_v61 = vsel %vm1994_vm8, %v1458_v54, %v797_v60  ;;  %vm817_vm2 = vcmp.lt.s32.totalorder %v1460_v55, 0  ;;  %v881_v0 = vsub.s32 0, %v2039_v53  ;;  %v961_v15 = vsel %vm951_vm1, %v958_v29, %v960_v44 }
  0xde   :  { %v1021_v56 = vand.u32 2147483647, %v1464_v59  ;;  %vm701_vm3 = vweird.f32 %v1456_v52  ;;  %v962_v24 = vsel %vm950_vm11, %v940_v45, %v943_v27  ;;  %v963_v35 = vsel %vm953_vm13, %v949_v57, 1326507024 }
  0xdf   :  { %v2062_v30 = vmul.u32.u64.low %v2027_v37, %v961_v15  ;;  %v2063_v10 = vmul.u32.u64.high %v2027_v37, %v961_v15, %v2062_v30  ;;  %v709_v31 = vsel %vm707_vm9, %v708_v25, %v1322_v26  ;;  %v1231_v32 = vmin.u32 %v881_v0, %v2039_v53 }
  0xe0   :  { %v954_v46 = vsel %vm950_vm11, %v934_v34, %v937_v49  ;;  %v956_v62 = vsel %vm952_vm15, %v940_v45, %v955_v40  ;;  %v706_v27 = vsel %vm704_vm10, %v1320_v48, %v705_v47  ;;  %1323 = vcosq.f32 %v800_v61 }
  0xe1   :  { %v964_v22 = vsel %vm952_vm15, %v946_v3, %v963_v35  ;;  %v1024_v57 = vand.u32 2139095040, %v1464_v59  ;;  %1325 = vsinq.f32 %v800_v61  ;;  %v883_v60 = vclz %v1231_v32 }
  0xe2   :  { %v901_v26 = vsub.s32 4, %v2016_v39  ;;  %v965_v29 = vsel %vm951_vm1, %v962_v24, %v964_v22  ;;  %v957_v49 = vsel %vm951_vm1, %v954_v46, %v956_v62  ;;  %v505_v3 = vsel %vm495_vm12, nan, %v1916_v12 }
  0xe3   :  { %v2084_v45 = vmul.u32.u64.low %v2027_v37, %v965_v29  ;;  %v2085_v33 = vmul.u32.u64.high %v2027_v37, %v965_v29, %v2084_v45  ;;  %v1025_v48 = vshrl.u32 %v1024_v57, 23  ;;  %v2090_v25 = vand.u32 3, %v801_v16 }
  0xe4   :  { %v1232_v34 = vadd.s32 4294967294, %v883_v60  ;;  %v1028_v47 = vand.u32 8388607, %v1021_v56  ;;  %v608_v40 = vsel %vm598_vm14, nan, %v607_v42  ;;  %vm2098_vm4 = vcmp.le.f32.partialorder %v815_v21, 0.7853982 }
  0xe5   :  { %v976_v44 = vadd.s32 1, %v2063_v10  ;;  %v1238_v61 = vadd.s32 4294967169, %v1025_v48  ;;  %v710_v20 = vsel %vm703_vm0, %v706_v27, %v709_v31  ;;  %v871_v12 = vadd.s32 %v1965_v18, %v1978_v2 }
  0xe6   :  { %vm1233_vm5 = vcmp.lt.s32.totalorder %v1232_v34, 0  ;;  %v973_v16 = vmul.u32 %v2027_v37, %v957_v49  ;;  %v2111_v21 = vsel %vm817_vm2, %v901_v26, %v2016_v39  ;;  %vm975_vm6 = vc.u32 %v2085_v33, %v2062_v30 }
  0xe7   :  { %v886_v43 = vsel %vm1233_vm5, 0, %v1232_v34  ;;  %v1031_v42 = vadd.s32 1, %v1238_v61  ;;  %vm807_vm7 = vcmp.eq.s32.totalorder %v2090_v25, 0  ;;  %v1029_v18 = vor.u32 8388608, %v1028_v47 }
  0xe8   :  { %v887_v8 = vsub.s32 32, %v886_v43  ;;  %v888_v0 = vshll.u32 %v2039_v53, %v886_v43  ;;  %v891_v15 = vsub.s32 4294967266, %v886_v43  ;;  %v977_v2 = vsel %vm975_vm6, %v976_v44, %v2063_v10 }
  0xe9   :  { %vm1032_vm8 = vcmp.gt.s32.totalorder %v1031_v42, 0  ;;  %v2120_v37 = vmul.f32 %v1910_v7, %v1719_v63  ;;  %v2123_v39 = vmul.f32 %v505_v3, %v1721_v5  ;;  %v711_v24 = vsel %vm701_vm3, nan, %v710_v20 }
  0xea   :  { %v889_v35 = vshrl.u32 %v871_v12, %v887_v8  ;;  %v892_v31 = vadd.s32 127, %v891_v15  ;;  %v978_v32 = vadd.s32 %v977_v2, %v973_v16  ;;  %v1324_v46 = vpop.eup %1323  ;;  %vm810_vm9 = vcmp.eq.s32.totalorder %v2090_v25, 2 }
  0xeb   :  { %v904_v53 = vsel %vm2098_vm4, 0, %v2111_v21  ;;  %v1033_v10 = vsel %vm1032_vm8, %v1031_v42, 0  ;;  %v1326_v62 = vpop.eup %1325  ;;  %v2132_v5 = vmul.f32 %v608_v40, %v1729_v23  ;;  %v2134_v22 = vshll.u32 %v1029_v18, 8 }
  0xec   :  { %v890_v63 = vor.u32 %v889_v35, %v888_v0  ;;  %v893_v7 = vshll.u32 %v892_v31, 23  ;;  %v979_v27 = vadd.s32 536870912, %v978_v32  ;;  %v1035_v52 = vand.u32 31, %v1033_v10 }
  0xed   :  { %v2137_v57 = vmul.f32 %v711_v24, %v1813_v17  ;;  %v1145_v60 = vcombine.low %v2120_v37, %v2123_v39  ;;  %v1402_v45 = vmov 1983009808   ;;  %v808_v3 = vxor.u32 2147483648, %v1326_v62 }
  0xee   :  { %v894_v26 = vor.u32 4788187, %v893_v7  ;;  %v897_v29 = vcvt.s32.f32 %v890_v63  ;;  %v2141_v49 = vshrl.u32 %v979_v27, 30  ;;  %v1148_v48 = vunpack.c.l.s4 %v1402_v45 }
  0xef   :  { %v811_v34 = vxor.u32 2147483648, %v1324_v46  ;;  %v2143_v47 = vshrl.u32 %v1033_v10, 5  ;;  %v1036_v23 = vsub.s32 32, %v1035_v52  ;;  %v1038_v17 = vshll.u32 %v1396_v4, %v1035_v52 }
  0xf0   :  { %v895_v40 = vand.u32 2147483647, %v894_v26  ;;  %v981_v44 = vshll.u32 %v2141_v49, 30  ;;  %v1041_v61 = vshll.u32 %v1397_v6, %v1035_v52  ;;  %v1044_v16 = vshll.u32 %v1398_v9, %v1035_v52 }
  0xf1   :  { %v1039_v20 = vshrl.u32 %v1397_v6, %v1036_v23  ;;  %v1042_v12 = vshrl.u32 %v1398_v9, %v1036_v23  ;;  %v1047_v43 = vshll.u32 %v1399_v11, %v1035_v52  ;;  %v1045_v0 = vshrl.u32 %v1399_v11, %v1036_v23 }
  0xf2   :  { %v898_v42 = vmul.f32 %v897_v29, %v895_v40  ;;  %v2152_v8 = vsub.s32 %v978_v32, %v981_v44  ;;  %v1048_v15 = vshrl.u32 %v1400_v13, %v1036_v23  ;;  %vm806_vm10 = vcmp.lt.s32.totalorder %v2090_v25, 2 }
  0xf3   :  { %v809_v18 = vsel %vm807_vm7, %v1324_v46, %v808_v3  ;;  %v812_v6 = vsel %vm810_vm9, %v811_v34, %v1326_v62  ;;  %v1146_v9 = vcombine.low %v2132_v5, %v2137_v57  ;;  %v1149_v2 = vunpack.c.0.s8 %v1148_v48 }
  0xf4   :  { %v899_v37 = vxor.u32 2147483648, %v898_v42  ;;  %v984_v39 = vsub.s32 0, %v2152_v8  ;;  %v1037_v24 = vshrl.u32 %v1396_v4, %v1036_v23  ;;  %v1040_v11 = vor.u32 %v1039_v20, %v1038_v17 }
  0xf5   :  { %v1043_v35 = vor.u32 %v1042_v12, %v1041_v61  ;;  %v1049_v31 = vor.u32 %v1048_v15, %v1047_v43  ;;  %v1050_v32 = vshll.u32 %v1400_v13, %v1035_v52  ;;  %v1051_v10 = vshrl.u32 %v1401_v19, %v1036_v23 }
  0xf6   :  { %vm267_vm11 = vcmp.eq.f32.partialorder %v1624_v41, 0.0  ;;  %v900_v46 = vsel %vm817_vm2, %v899_v37, %v898_v42  ;;  %v1235_v62 = vmin.u32 %v984_v39, %v2152_v8  ;;  %v1046_v63 = vor.u32 %v1045_v0, %v1044_v16 }
  0xf7   :  { %vm1053_vm12 = vcmp.lt.s32.totalorder %v2143_v47, 1  ;;  %vm804_vm13 = vweird.f32 %v1458_v54  ;;  %v903_v4 = vsel %vm2098_vm4, %v1460_v55, %v900_v46  ;;  %v1052_v7 = vor.u32 %v1051_v10, %v1050_v32 }
  0xf8   :  { %vm1055_vm14 = vcmp.lt.s32.totalorder %v2143_v47, 3  ;;  %v2178_v13 = vsub.s32 %v1149_v2, %v1426_v1  ;;  %1327 = vcosq.f32 %v903_v4  ;;  %v986_v19 = vclz %v1235_v62 }
  0xf9   :  { %vm1054_vm15 = vcmp.lt.s32.totalorder %v2143_v47, 2  ;;  %vm1056_vm0 = vcmp.lt.s32.totalorder %v2143_v47, 4  ;;  %1329 = vsinq.f32 %v903_v4  ;;  %v1061_v5 = vsel %vm1053_vm12, %v1040_v11, %v1043_v35 }
  0xfa   :  { %v1058_v27 = vsel %vm1056_vm0, %v1046_v63, 2102212464  ;;  %v1062_v52 = vsel %vm1056_vm0, %v1049_v31, 920167782  ;;  %v1236_v57 = vadd.s32 4294967294, %v986_v19  ;;  %v1057_v26 = vsel %vm1053_vm12, %v1037_v24, %v1040_v11 }
  0xfb   :  { %v1063_v1 = vsel %vm1055_vm14, %v1046_v63, %v1062_v52  ;;  %v1065_v29 = vsel %vm1053_vm12, %v1043_v35, %v1046_v63  ;;  %v1059_v45 = vsel %vm1055_vm14, %v1043_v35, %v1058_v27  ;;  %v1066_v3 = vsel %vm1056_vm0, %v1052_v7, 1326507024 }
  0xfc   :  { %v1064_v48 = vsel %vm1054_vm15, %v1061_v5, %v1063_v1  ;;  %v1153_v34 = vrot.slane %v1145_v60, %v2178_v13  ;;  %vm1237_vm1 = vcmp.lt.s32.totalorder %v1236_v57, 0  ;;  %v1067_v23 = vsel %vm1055_vm14, %v1049_v31, %v1066_v3 }
  0xfd   :  { %v2198_v40 = vmul.u32.u64.low %v2134_v22, %v1064_v48  ;;  %v2199_v44 = vmul.u32.u64.high %v2134_v22, %v1064_v48, %v2198_v40  ;;  %v908_v17 = vand.u32 3, %v904_v53  ;;  %v989_v61 = vsel %vm1237_vm1, 0, %v1236_v57 }
  0xfe   :  { %v1068_v20 = vsel %vm1054_vm15, %v1065_v29, %v1067_v23  ;;  %v1160_v60 = vrot.slane %v1146_v9, %v2178_v13  ;;  %v813_v12 = vsel %vm806_vm10, %v809_v18, %v812_v6  ;;  %v974_v16 = vadd.s32 %v2062_v30, %v2085_v33 }
  0xff   :  { %v994_v43 = vsub.s32 4294967266, %v989_v61  ;;  %v1060_v42 = vsel %vm1054_vm15, %v1057_v26, %v1059_v45  ;;  %v990_v0 = vsub.s32 32, %v989_v61  ;;  %v2311_v2 = vshrl.u32 %v1431_v36, 9 }
 0x100   :  { %v2216_v21 = vmul.u32.u64.low %v2134_v22, %v1068_v20  ;;  %v2217_v53 = vmul.u32.u64.high %v2134_v22, %v1068_v20, %v2216_v21  ;;  %v1161_v15 = vcombine.low %v1153_v34, %v1160_v60  ;;  %v170_v25 = vsub.f32 2.0, %v1454_v51 }
 0x101   :  { %v155_v9 = vor.u32 1065353216, %v2311_v2  ;;  %v995_v18 = vadd.s32 127, %v994_v43  ;;  %v1079_v6 = vadd.s32 1, %v2199_v44  ;;  %v2312_v30 = vand.u32 2147483648, %v1624_v41 }
 0x102   :  { %v288_v47 = vmul.f32 0.1, %v1734_v14  ;;  %v1076_v37 = vmul.u32 %v2134_v22, %v1060_v42  ;;  %v1181_v39 = vadd.f32 %v1161_v15, %v1127_v38  ;;  %v1328_v24 = vpop.eup %1327  ;;  %v814_v36 = vsel %vm804_vm13, nan, %v813_v12 }
 0x103   :  { %v269_v33 = vsel %vm267_vm11, %v2312_v30, %v1796_v50  ;;  %vm910_vm2 = vcmp.eq.s32.totalorder %v908_v17, 0  ;;  %vm913_vm3 = vcmp.eq.s32.totalorder %v908_v17, 2  ;;  %v991_v51 = vshll.u32 %v2152_v8, %v989_v61  ;;  %v1330_v11 = vpop.eup %1329 }
 0x104   :  { %v914_v35 = vxor.u32 2147483648, %v1328_v24  ;;  %v992_v31 = vshrl.u32 %v974_v16, %v990_v0  ;;  %v996_v32 = vshll.u32 %v995_v18, 23  ;;  %vm1078_vm4 = vc.u32 %v2217_v53, %v2198_v40  ;;  %1185 = vst [vmem:[#allocation5] sm:$0xff] %v1181_v39 }
 0x105   :  { %v171_v41 = vsub.f32 2.0, %v155_v9  ;;  %vm909_vm5 = vcmp.lt.s32.totalorder %v908_v17, 2  ;;  %v911_v14 = vxor.u32 2147483648, %v1330_v11  ;;  %v1080_v50 = vsel %vm1078_vm4, %v1079_v6, %v2199_v44 }
 0x106   :  { %v289_v22 = vmul.f32 0.1, %v269_v33  ;;  %vm907_vm6 = vweird.f32 %v1460_v55  ;;  %v915_v54 = vsel %vm913_vm3, %v914_v35, %v1330_v11  ;;  %v1081_v10 = vadd.s32 %v1080_v50, %v1076_v37 }
 0x107   :  { %1331 = vlog2.f32 %v170_v25  ;;  %v912_v8 = vsel %vm910_vm2, %v1328_v24, %v911_v14  ;;  %v2238_v46 = vmul.f32 %v814_v36, %v288_v47  ;;  %v993_v63 = vor.u32 %v992_v31, %v991_v51 }
 0x108   :  { %v916_v62 = vsel %vm909_vm5, %v912_v8, %v915_v54  ;;  %v997_v4 = vor.u32 4788187, %v996_v32  ;;  %v1082_v7 = vadd.s32 536870912, %v1081_v10  ;;  %1333 = vlog2.f32 %v171_v41 }
 0x109   :  { %v917_v19 = vsel %vm907_vm6, nan, %v916_v62  ;;  %v1000_v57 = vcvt.s32.f32 %v993_v63  ;;  %vm920_vm7 = vcmp.lt.s32.totalorder %v1462_v58, 0  ;;  %vm2247_vm8 = vcmp.le.f32.partialorder %v918_v28, 0.7853982 }
 0x10a   :  { %v1083_v27 = vshrl.u32 %v1082_v7, 30  ;;  %v2240_v5 = vmul.f32 %v917_v19, %v289_v22  ;;  %v998_v52 = vand.u32 2147483647, %v997_v4  ;;  %v1077_v16 = vadd.s32 %v2198_v40, %v2217_v53 }
 0x10b   :  { %v1004_v6 = vsub.s32 4, %v2141_v49  ;;  %vm1023_vm10 = vcmp.lt.s32.totalorder %v1464_v59, 0  ;;  %vm2267_vm11 = vcmp.le.f32.partialorder %v1021_v56, 0.7853982  ;;  %vm1010_vm3 = vweird.f32 %v1462_v58 }
 0x10c   :  { %v1084_v26 = vshll.u32 %v1083_v27, 30  ;;  %v1162_v55 = vcombine.low %v2238_v46, %v2240_v5  ;;  %v1001_v29 = vmul.f32 %v1000_v57, %v998_v52  ;;  %v1107_v36 = vsub.s32 4, %v1083_v27 }
 0x10d   :  { %v1005_v33 = vsel %vm920_vm7, %v1004_v6, %v2141_v49 }
 0x10e   :  { %v1085_v1 = vsub.s32 %v1081_v10, %v1084_v26  ;;  %v1002_v23 = vxor.u32 2147483648, %v1001_v29  ;;  %v1007_v37 = vsel %vm2247_vm8, 0, %v1005_v33  ;;  %v1108_v14 = vsel %vm1023_vm10, %v1107_v36, %v1083_v27 }
 0x10f   :  { %v1011_v32 = vand.u32 3, %v1007_v37  ;;  %v1110_v10 = vsel %vm2267_vm11, 0, %v1108_v14 }
 0x110   :  { %v1087_v45 = vsub.s32 0, %v1085_v1  ;;  %v1003_v12 = vsel %vm920_vm7, %v1002_v23, %v1001_v29  ;;  %v1114_v19 = vand.u32 3, %v1110_v10  ;;  %vm1113_vm7 = vweird.f32 %v1464_v59 }
 0x111   :  { %v1332_v48 = vpop.eup %1331  ;;  %v1006_v15 = vsel %vm2247_vm8, %v1462_v58, %v1003_v12  ;;  %vm1013_vm13 = vcmp.eq.s32.totalorder %v1011_v32, 0  ;;  %vm1016_vm14 = vcmp.eq.s32.totalorder %v1011_v32, 2  ;;  %vm1012_vm1 = vcmp.lt.s32.totalorder %v1011_v32, 2 }
 0x112   :  { %v1239_v3 = vmin.u32 %v1087_v45, %v1085_v1  ;;  %v1334_v34 = vpop.eup %1333  ;;  %v217_v17 = vmul.f32 0.6931472, %v1332_v48  ;;  %vm1119_vm4 = vcmp.eq.s32.totalorder %v1114_v19, 2  ;;  %vm1116_vm5 = vcmp.eq.s32.totalorder %v1114_v19, 0 }
 0x113   :  { %v219_v20 = vmul.f32 0.6931472, %v1334_v34  ;;  %vm1115_vm6 = vcmp.lt.s32.totalorder %v1114_v19, 2 }
 0x114   :  { %v1089_v44 = vclz %v1239_v3  ;;  %v226_v43 = vmul.f32 -2.0, %v217_v17 }
 0x115   :  { %v227_v28 = vmul.f32 -2.0, %v219_v20 }
 0x116   :  { %v1240_v61 = vadd.s32 4294967294, %v1089_v44  ;;  %1335 = vrsqrt.f32 %v226_v43  ;;  %vm272_vm12 = vcmp.eq.f32.partialorder %v226_v43, inf  ;;  %v275_v8 = vand.u32 2147483648, %v226_v43 }
 0x117   :  { %1337 = vcosq.f32 %v1006_v15  ;;  %vm279_vm15 = vcmp.eq.f32.partialorder %v227_v28, inf  ;;  %vm274_vm0 = vcmp.eq.f32.partialorder %v226_v43, 0.0  ;;  %v282_v63 = vand.u32 2147483648, %v227_v28 }
 0x118   :  { %vm1241_vm9 = vcmp.lt.s32.totalorder %v1240_v61, 0  ;;  %1339 = vsinq.f32 %v1006_v15  ;;  %vm281_vm2 = vcmp.eq.f32.partialorder %v227_v28, 0.0 }
 0x119   :  { %v1092_v42 = vsel %vm1241_vm9, 0, %v1240_v61  ;;  %1341 = vrsqrt.f32 %v227_v28 }
 0x11a   :  { %v1093_v38 = vsub.s32 32, %v1092_v42  ;;  %v1094_v0 = vshll.u32 %v1085_v1, %v1092_v42  ;;  %v1097_v21 = vsub.s32 4294967266, %v1092_v42  ;;  %v1128_v42 = vld [vmem:[#allocation2 + $0x8] sm:$0xff] }
 0x11c   :  { %v1095_v2 = vshrl.u32 %v1077_v16, %v1093_v38  ;;  %v1098_v9 = vadd.s32 127, %v1097_v21  ;;  %v1170_v16 = vrot.slane %v1162_v55, %v2178_v13 }
 0x11e   :  { %v1096_v25 = vor.u32 %v1095_v2, %v1094_v0  ;;  %v1099_v18 = vshll.u32 %v1098_v9, 23 }
 0x120   :  { %v1100_v40 = vor.u32 4788187, %v1099_v18  ;;  %v1103_v53 = vcvt.s32.f32 %v1096_v25  ;;  %v1336_v51 = vpop.eup %1335 }
 0x121   :  { %v1338_v11 = vpop.eup %1337  ;;  %v271_v50 = vmul.f32 %v1336_v51, %v226_v43 }
 0x122   :  { %v1101_v30 = vand.u32 2147483647, %v1100_v40  ;;  %v1340_v31 = vpop.eup %1339  ;;  %v1017_v22 = vxor.u32 2147483648, %v1338_v11 }
 0x123   :  { %v1342_v41 = vpop.eup %1341  ;;  %v1014_v56 = vxor.u32 2147483648, %v1340_v31  ;;  %v273_v62 = vsel %vm272_vm12, %v226_v43, %v271_v50 }
 0x124   :  { %v1104_v47 = vmul.f32 %v1103_v53, %v1101_v30  ;;  %v278_v54 = vmul.f32 %v1342_v41, %v227_v28  ;;  %v1018_v7 = vsel %vm1016_vm14, %v1017_v22, %v1340_v31  ;;  %v276_v52 = vsel %vm274_vm0, %v275_v8, %v273_v62 }
 0x125   :  { %v1015_v4 = vsel %vm1013_vm13, %v1338_v11, %v1014_v56  ;;  %v290_v45 = vmul.f32 0.1, %v276_v52 }
 0x126   :  { %v1105_v24 = vxor.u32 2147483648, %v1104_v47  ;;  %v280_v27 = vsel %vm279_vm15, %v227_v28, %v278_v54  ;;  %v1019_v57 = vsel %vm1012_vm1, %v1015_v4, %v1018_v7 }
 0x127   :  { %v283_v1 = vsel %vm281_vm2, %v282_v63, %v280_v27  ;;  %v1020_v3 = vsel %vm1010_vm3, nan, %v1019_v57 }
 0x128   :  { %v1106_v35 = vsel %vm1023_vm10, %v1105_v24, %v1104_v47  ;;  %v291_v23 = vmul.f32 0.1, %v283_v1  ;;  %v1135_v20 = vmul.f32 %v1020_v3, %v290_v45 }
 0x129   :  { %v1109_v49 = vsel %vm2267_vm11, %v1464_v59, %v1106_v35 }
 0x12a   :  { %1343 = vcosq.f32 %v1109_v49 }
 0x12b   :  { %1345 = vsinq.f32 %v1109_v49 }
 0x134   :  { %v1344_v26 = vpop.eup %1343 }
 0x135   :  { %v1346_v29 = vpop.eup %1345  ;;  %v1120_v48 = vxor.u32 2147483648, %v1344_v26 }
 0x136   :  { %v1117_v34 = vxor.u32 2147483648, %v1346_v29 }
 0x137   :  { %v1121_v44 = vsel %vm1119_vm4, %v1120_v48, %v1346_v29 }
 0x138   :  { %v1118_v17 = vsel %vm1116_vm5, %v1344_v26, %v1117_v34 }
 0x139   :  { %v1122_v61 = vsel %vm1115_vm6, %v1118_v17, %v1121_v44 }
 0x13a   :  { %v1123_v60 = vsel %vm1113_vm7, nan, %v1122_v61 }
 0x13b   :  { %v1136_v58 = vmul.f32 %v1123_v60, %v291_v23 }
 0x13d   :  { %v1163_v12 = vcombine.low %v1135_v20, %v1136_v58 }
 0x13f   :  { %v1177_v43 = vrot.slane %v1163_v12, %v2178_v13 }
 0x141   :  { %v1178_v38 = vcombine.low %v1170_v16, %v1177_v43 }
 0x143   :  { %v1182_v0 = vadd.f32 %v1178_v38, %v1128_v42 }
 0x145   :  { %1186 = vst [vmem:[#allocation5 + $0x8] sm:$0xff] %v1182_v0 }
 0x146   :  { %1380 = shalt.err (!%p1377_p12)
}
 0x147   :  { %s1381_s22 = scalar_lea.hbm %s2296_s1, 256 }
 0x148   :  { %p1382_p13 = scmp.ne.s32.totalorder %s2296_s1, %s1381_s22  ;;  %p1385_p0 = scmp.lt.u32.totalorder %s1381_s22, %s2296_s1 }
 0x14a   :  { %p1387_p1 = pnand %p1385_p0, %p1382_p13 }
 0x14c   :  { %1390 = shalt.err (!%p1387_p1)
}
 0x14d   :  { %1196 = dma.vmem_to_hbm [thread:$0]  %s1194_s18, 256, %s2296_s1, [#allocation4]  }
 0x14e   :  { %1393 = dma.done.wait [#allocation4], 256  }
 0x14f   :  { %1394 = vsyncadd [#allocation4], 4294967040 }
 0x150   :  { %1200 = vsyncpa [#allocation3], 1 }
 0x151   :  { %1201 = vsyncpa [#allocation4], 1 }

</bundles_post_ra>
